<compile_context>
chip_gen: v6e
topology: v6e:2x2x1
jax: 0.10.0
libtpu: 0.0.40
codegen_flags: <defaults>
</compile_context>

<pallas_src>
import functools
import numpy as np
import jax
import jax.numpy as jnp
from jax.experimental import pallas as pl
from jax.experimental.pallas import tpu as pltpu

LN_EPS = 1e-5
GELU_C = 0.7978845608028654  # sqrt(2/pi)


def _gelu_tanh(h):
    # TODO(synk): PyTorch nn.GELU() default is the exact erf form; Mosaic-safe
    # tanh approximation is used here (max abs deviation ~1e-3).
    return 0.5 * h * (1.0 + jnp.tanh(GELU_C * (h + 0.044715 * h * h * h)))


def _layer_norm(x, w, b):
    mu = jnp.mean(x, axis=-1, keepdims=True)
    var = jnp.mean((x - mu) ** 2, axis=-1, keepdims=True)
    return (x - mu) * jax.lax.rsqrt(var + LN_EPS) * w + b


# ---------------------------------------------------------------------------
# Fused kernel: LN -> MHSA(+rel bias) -> proj -> residual -> LN -> MLP -> residual
# Single invocation (no grid); tokens of all batches folded into one (B*N, C).
# ---------------------------------------------------------------------------
def fused_transformer_kernel(x_ref, ln1w_ref, ln1b_ref, wqkv_ref, wo_ref, bo_ref,
                             bias_ref, ln2w_ref, ln2b_ref, w1_ref, b1_ref, w2_ref,
                             b2_ref, out_ref, o_scratch,
                             *, batch, seq, heads, dim_head, scale):
    inner = heads * dim_head
    bf16 = jnp.bfloat16

    x = x_ref[...]                                           # (B*N, C) f32

    # --- PreNorm + QKV (one matmul for all batches / heads) ---
    xn = _layer_norm(x, ln1w_ref[...], ln1b_ref[...])
    qkv = jax.lax.dot_general(xn.astype(bf16), wqkv_ref[...],
                              (((1,), (1,)), ((), ())),
                              preferred_element_type=jnp.float32)  # (B*N, 3*inner)

    # --- attention per (batch, head); head outputs assembled in VMEM scratch ---
    for b in range(batch):
        r0 = b * seq
        for h in range(heads):
            c0 = h * dim_head
            q = qkv[r0:r0 + seq, c0:c0 + dim_head]                       # (N, D)
            k = qkv[r0:r0 + seq, inner + c0:inner + c0 + dim_head]       # (N, D)
            v = qkv[r0:r0 + seq, 2 * inner + c0:2 * inner + c0 + dim_head]

            s = jax.lax.dot_general(q.astype(bf16), k.astype(bf16),
                                    (((1,), (1,)), ((), ())),
                                    preferred_element_type=jnp.float32)  # (N, N)
            s = s * scale + bias_ref[h]                      # f32 scores + rel bias
            s = s - jnp.max(s, axis=-1, keepdims=True)       # f32 softmax
            p = jnp.exp(s)
            p = p * pl.reciprocal(jnp.sum(p, axis=-1, keepdims=True), approx=True)

            o = jnp.dot(p.astype(bf16), v.astype(bf16),
                        preferred_element_type=jnp.float32)              # (N, D)
            o_scratch[r0:r0 + seq, c0:c0 + dim_head] = o

    # single output projection for all heads / batches
    attn_out = jax.lax.dot_general(o_scratch[...].astype(bf16), wo_ref[...],
                                   (((1,), (1,)), ((), ())),
                                   preferred_element_type=jnp.float32) + bo_ref[...]
    y = x + attn_out                                         # residual (inp == oup)

    # --- PreNorm + FeedForward ---
    yn = _layer_norm(y, ln2w_ref[...], ln2b_ref[...])
    hdn = jax.lax.dot_general(yn.astype(bf16), w1_ref[...],
                              (((1,), (1,)), ((), ())),
                              preferred_element_type=jnp.float32) + b1_ref[...]
    hdn = _gelu_tanh(hdn)
    ff = jax.lax.dot_general(hdn.astype(bf16), w2_ref[...],
                             (((1,), (1,)), ((), ())),
                             preferred_element_type=jnp.float32) + b2_ref[...]

    out_ref[...] = y + ff


# ---------------------------------------------------------------------------
# Wrapper (jitted so the two tiny layout transposes fuse into the program)
# ---------------------------------------------------------------------------
@functools.partial(jax.jit, static_argnames=("image_size", "heads", "dim_head"))
def transformer_forward(x, params, image_size, heads, dim_head):
    B, C, ID, IH, IW = x.shape
    N = ID * IH * IW
    inner = heads * dim_head
    oup = params["wo"].shape[0]
    scale = dim_head ** -0.5
    assert oup == C  # residual `x + attn(x)` requires inp == oup

    # Fold batch into the token dim once: (B,C,D,H,W) -> (B*N, C)
    tokens = jnp.swapaxes(x.reshape(B, C, N), 1, 2).reshape(B * N, C)

    kernel = functools.partial(fused_transformer_kernel, batch=B, seq=N,
                               heads=heads, dim_head=dim_head, scale=scale)
    vmem_spec = pl.BlockSpec(memory_space=pltpu.MemorySpace.VMEM)

    out_tokens = pl.pallas_call(
        kernel,
        out_shape=jax.ShapeDtypeStruct((B * N, oup), jnp.float32),
        in_specs=[vmem_spec] * 13,
        out_specs=vmem_spec,
        scratch_shapes=[pltpu.VMEM((B * N, inner), jnp.float32)],
    )(tokens,
      params["ln1_w"], params["ln1_b"],
      params["wqkv"].astype(jnp.bfloat16),        # bf16 weights for the MXU
      params["wo"].astype(jnp.bfloat16),
      params["bo"], params["bias"],
      params["ln2_w"], params["ln2_b"],
      params["w1"].astype(jnp.bfloat16), params["b1"],
      params["w2"].astype(jnp.bfloat16), params["b2"])

    return jnp.swapaxes(out_tokens.reshape(B, N, oup), 1, 2).reshape(B, C, ID, IH, IW)


# ---------------------------------------------------------------------------
# Deterministic parameter init (shapes from the PyTorch __init__)
# ---------------------------------------------------------------------------
def make_params(key, inp, oup, image_size, heads, dim_head):
    ID, IH, IW = image_size
    N = ID * IH * IW
    inner = heads * dim_head
    hidden = int(inp * 4)
    ks = jax.random.split(key, 12)

    def lin_w(k, out_f, in_f):
        bound = 1.0 / np.sqrt(in_f)
        return jax.random.uniform(k, (out_f, in_f), jnp.float32, -bound, bound)

    def lin_b(k, out_f, in_f):
        bound = 1.0 / np.sqrt(in_f)
        return jax.random.uniform(k, (1, out_f), jnp.float32, -bound, bound)

    params = {
        "ln1_w": 1.0 + 0.1 * jax.random.normal(ks[0], (1, inp), jnp.float32),
        "ln1_b": 0.1 * jax.random.normal(ks[1], (1, inp), jnp.float32),
        "wqkv": lin_w(ks[2], 3 * inner, inp),
        "wo": lin_w(ks[3], oup, inner),
        "bo": lin_b(ks[4], oup, inner),
        "ln2_w": 1.0 + 0.1 * jax.random.normal(ks[5], (1, oup), jnp.float32),
        "ln2_b": 0.1 * jax.random.normal(ks[6], (1, oup), jnp.float32),
        "w1": lin_w(ks[7], hidden, oup),
        "b1": lin_b(ks[8], hidden, oup),
        "w2": lin_w(ks[9], oup, hidden),
        "b2": lin_b(ks[10], oup, hidden),
    }

    # Relative position bias. The module initializes the table to zeros (bias=0);
    # a random table is used here to exercise the bias-add path. The gather is
    # parameter-setup glue done in plain numpy/JAX.
    # TODO(synk): the module's 3D relative-index math can produce negative
    # indices (no (IW-1) offset / (2*IW-1) stride on the last axis); indices are
    # wrapped into range here. Kernel and reference consume the same bias tensor.
    table_rows = (2 * ID - 1) * (2 * IH - 1) * (2 * IW - 1)
    table = 0.1 * jax.random.normal(ks[11], (table_rows, heads), jnp.float32)

    coords = np.stack(np.meshgrid(np.arange(ID), np.arange(IH), np.arange(IW),
                                  indexing="ij"))
    coords = coords.reshape(3, -1).astype(np.int64)
    rel = coords[:, :, None] - coords[:, None, :]           # (3, N, N)
    rel[0] += IH - 1 + (ID - 1)
    rel[1] += IW - 1 + (ID - 1)
    rel[0] *= 2 * IH - 1
    rel_index = rel.transpose(1, 2, 0).sum(-1).reshape(-1) % table_rows  # (N*N,)

    gathered = table[jnp.asarray(rel_index)]                # (N*N, heads)
    params["bias"] = gathered.reshape(N, N, heads).transpose(2, 0, 1)  # (heads, N, N)
    return params


# ---------------------------------------------------------------------------
# Pure-JAX f32 reference (mirrors the PyTorch forward, dropout=0, tanh-GELU)
# ---------------------------------------------------------------------------
def reference_forward(x, params, image_size, heads, dim_head):
    B, C, ID, IH, IW = x.shape
    N = ID * IH * IW
    inner = heads * dim_head
    scale = dim_head ** -0.5
    t = x.reshape(B, C, N).transpose(0, 2, 1)

    def ln(v, w, b):
        mu = v.mean(-1, keepdims=True)
        var = ((v - mu) ** 2).mean(-1, keepdims=True)
        return (v - mu) / jnp.sqrt(var + LN_EPS) * w + b

    xn = ln(t, params["ln1_w"][0], params["ln1_b"][0])
    qkv = xn @ params["wqkv"].T                              # (B, N, 3*inner)
    qkv = qkv.reshape(B, N, 3, heads, dim_head).transpose(2, 0, 3, 1, 4)
    q, k, v = qkv[0] * scale, qkv[1], qkv[2]                 # (B, H, N, D)
    attn = jnp.einsum("bhnd,bhmd->bhnm", q, k) + params["bias"][None]
    attn = jax.nn.softmax(attn, axis=-1)
    o = jnp.einsum("bhnm,bhmd->bhnd", attn, v)
    o = o.transpose(0, 2, 1, 3).reshape(B, N, inner)
    o = o @ params["wo"].T + params["bo"][0]
    y = t + o

    yn = ln(y, params["ln2_w"][0], params["ln2_b"][0])
    h = _gelu_tanh(yn @ params["w1"].T + params["b1"][0])
    z = y + (h @ params["w2"].T + params["b2"][0])
    return z.transpose(0, 2, 1).reshape(B, C, ID, IH, IW)


if __name__ == "__main__":
    B = 2
    inp = oup = 16                  # residual path requires inp == oup (downsample=False)
    image_size = (2, 4, 4)          # (id, ih, iw) -> N = 32 tokens
    heads, dim_head = 2, 8

    key = jax.random.PRNGKey(0)
    kx, kp = jax.random.split(key)
    x = jax.random.normal(kx, (B, inp) + image_size, jnp.float32)
    params = make_params(kp, inp, oup, image_size, heads, dim_head)

    out = transformer_forward(x, params, image_size, heads, dim_head)
    out = jax.block_until_ready(out)

    ref = reference_forward(x, params, image_size, heads, dim_head)
    assert out.shape == x.shape
    assert bool(jnp.isfinite(out).all())
    max_diff = float(jnp.max(jnp.abs(out - ref)))
    # Tolerance covers bf16 MXU rounding (f32 accumulation) + tanh-vs-erf GELU
    # against the pure-f32 reference.
    assert max_diff < 1e-1, f"max diff {max_diff}"
    print("KERNEL_OK")
</pallas_src>

<mosaic_0001>
module attributes {stable_mosaic.version = 11 : i64} {
  func.func @fused_transformer_kernel(%arg0: memref<64x16xf32, #tpu.memory_space<vmem>>, %arg1: memref<1x16xf32, #tpu.memory_space<vmem>>, %arg2: memref<1x16xf32, #tpu.memory_space<vmem>>, %arg3: memref<48x16xbf16, #tpu.memory_space<vmem>>, %arg4: memref<16x16xbf16, #tpu.memory_space<vmem>>, %arg5: memref<1x16xf32, #tpu.memory_space<vmem>>, %arg6: memref<2x32x32xf32, #tpu.memory_space<vmem>>, %arg7: memref<1x16xf32, #tpu.memory_space<vmem>>, %arg8: memref<1x16xf32, #tpu.memory_space<vmem>>, %arg9: memref<64x16xbf16, #tpu.memory_space<vmem>>, %arg10: memref<1x64xf32, #tpu.memory_space<vmem>>, %arg11: memref<16x64xbf16, #tpu.memory_space<vmem>>, %arg12: memref<1x16xf32, #tpu.memory_space<vmem>>, %arg13: memref<64x16xf32, #tpu.memory_space<vmem>>, %arg14: memref<64x16xf32, #tpu.memory_space<vmem>>) attributes {dimension_semantics = [], scalar_prefetch = 0 : i64, scratch_operands = 1 : i64, tpu.core_type = #tpu.core_type<tc>} {
    %c0 = arith.constant 0 : index
    %c0_0 = arith.constant 0 : index
    %0 = vector.load %arg0[%c0, %c0_0] : memref<64x16xf32, #tpu.memory_space<vmem>>, vector<64x16xf32>
    %c0_1 = arith.constant 0 : index
    %c0_2 = arith.constant 0 : index
    %1 = vector.load %arg1[%c0_1, %c0_2] : memref<1x16xf32, #tpu.memory_space<vmem>>, vector<1x16xf32>
    %c0_3 = arith.constant 0 : index
    %c0_4 = arith.constant 0 : index
    %2 = vector.load %arg2[%c0_3, %c0_4] : memref<1x16xf32, #tpu.memory_space<vmem>>, vector<1x16xf32>
    %cst = arith.constant dense<0.000000e+00> : vector<64xf32>
    %3 = vector.multi_reduction <add>, %0, %cst [1] : vector<64x16xf32> to vector<64xf32>
    %4 = vector.shape_cast %3 : vector<64xf32> to vector<64x1xf32>
    %cst_5 = arith.constant 1.600000e+01 : f32
    %5 = vector.broadcast %cst_5 : f32 to vector<64x1xf32>
    %6 = arith.divf %4, %5 : vector<64x1xf32>
    %7 = vector.broadcast %6 : vector<64x1xf32> to vector<64x16xf32>
    %8 = arith.subf %0, %7 : vector<64x16xf32>
    %9 = arith.mulf %8, %8 : vector<64x16xf32>
    %cst_6 = arith.constant dense<0.000000e+00> : vector<64xf32>
    %10 = vector.multi_reduction <add>, %9, %cst_6 [1] : vector<64x16xf32> to vector<64xf32>
    %11 = vector.shape_cast %10 : vector<64xf32> to vector<64x1xf32>
    %cst_7 = arith.constant 1.600000e+01 : f32
    %12 = vector.broadcast %cst_7 : f32 to vector<64x1xf32>
    %13 = arith.divf %11, %12 : vector<64x1xf32>
    %14 = vector.broadcast %6 : vector<64x1xf32> to vector<64x16xf32>
    %15 = arith.subf %0, %14 : vector<64x16xf32>
    %cst_8 = arith.constant 9.99999974E-6 : f32
    %16 = vector.broadcast %cst_8 : f32 to vector<64x1xf32>
    %17 = arith.addf %13, %16 : vector<64x1xf32>
    %18 = math.rsqrt %17 : vector<64x1xf32>
    %19 = vector.broadcast %18 : vector<64x1xf32> to vector<64x16xf32>
    %20 = arith.mulf %15, %19 : vector<64x16xf32>
    %21 = vector.broadcast %1 : vector<1x16xf32> to vector<64x16xf32>
    %22 = arith.mulf %20, %21 : vector<64x16xf32>
    %23 = vector.broadcast %2 : vector<1x16xf32> to vector<64x16xf32>
    %24 = arith.addf %22, %23 : vector<64x16xf32>
    %25 = arith.truncf %24 : vector<64x16xf32> to vector<64x16xbf16>
    %c0_9 = arith.constant 0 : index
    %c0_10 = arith.constant 0 : index
    %26 = vector.load %arg3[%c0_9, %c0_10] : memref<48x16xbf16, #tpu.memory_space<vmem>>, vector<48x16xbf16>
    %cst_11 = arith.constant dense<0.000000e+00> : vector<64x48xf32>
    %27 = tpu.matmul %25, %26, %cst_11 {dimension_numbers = #tpu.dot_dimension_numbers<[1], [1], [0], [0], [0, 0, 1, 0], [], []>} : vector<64x16xbf16>, vector<48x16xbf16>, vector<64x48xf32> -> vector<64x48xf32>
    %28 = vector.extract_strided_slice %27 {offsets = [0, 0], sizes = [32, 8], strides = [1, 1]} : vector<64x48xf32> to vector<32x8xf32>
    %29 = vector.extract_strided_slice %27 {offsets = [0, 16], sizes = [32, 8], strides = [1, 1]} : vector<64x48xf32> to vector<32x8xf32>
    %30 = vector.extract_strided_slice %27 {offsets = [0, 32], sizes = [32, 8], strides = [1, 1]} : vector<64x48xf32> to vector<32x8xf32>
    %31 = arith.truncf %28 : vector<32x8xf32> to vector<32x8xbf16>
    %32 = arith.truncf %29 : vector<32x8xf32> to vector<32x8xbf16>
    %cst_12 = arith.constant dense<0.000000e+00> : vector<32x32xf32>
    %33 = tpu.matmul %31, %32, %cst_12 {dimension_numbers = #tpu.dot_dimension_numbers<[1], [1], [0], [0], [0, 0, 1, 0], [], []>} : vector<32x8xbf16>, vector<32x8xbf16>, vector<32x32xf32> -> vector<32x32xf32>
    %cst_13 = arith.constant 0.353553385 : f32
    %34 = vector.broadcast %cst_13 : f32 to vector<32x32xf32>
    %35 = arith.mulf %33, %34 : vector<32x32xf32>
    %c0_14 = arith.constant 0 : index
    %c0_15 = arith.constant 0 : index
    %c0_16 = arith.constant 0 : index
    %36 = vector.load %arg6[%c0_14, %c0_15, %c0_16] : memref<2x32x32xf32, #tpu.memory_space<vmem>>, vector<1x32x32xf32>
    %37 = vector.shape_cast %36 : vector<1x32x32xf32> to vector<32x32xf32>
    %38 = arith.addf %35, %37 : vector<32x32xf32>
    %cst_17 = arith.constant dense<0xFF800000> : vector<32xf32>
    %39 = vector.multi_reduction <maximumf>, %38, %cst_17 [1] : vector<32x32xf32> to vector<32xf32>
    %40 = vector.shape_cast %39 : vector<32xf32> to vector<32x1xf32>
    %41 = vector.broadcast %40 : vector<32x1xf32> to vector<32x32xf32>
    %42 = arith.subf %38, %41 : vector<32x32xf32>
    %43 = math.exp %42 : vector<32x32xf32>
    %cst_18 = arith.constant dense<0.000000e+00> : vector<32xf32>
    %44 = vector.multi_reduction <add>, %43, %cst_18 [1] : vector<32x32xf32> to vector<32xf32>
    %45 = vector.shape_cast %44 : vector<32xf32> to vector<32x1xf32>
    %46 = tpu.reciprocal %45 {approx = true} : vector<32x1xf32> -> vector<32x1xf32>
    %47 = vector.broadcast %46 : vector<32x1xf32> to vector<32x32xf32>
    %48 = arith.mulf %43, %47 : vector<32x32xf32>
    %49 = arith.truncf %48 : vector<32x32xf32> to vector<32x32xbf16>
    %50 = arith.truncf %30 : vector<32x8xf32> to vector<32x8xbf16>
    %cst_19 = arith.constant dense<0.000000e+00> : vector<32x8xf32>
    %51 = tpu.matmul %49, %50, %cst_19 {dimension_numbers = #tpu.dot_dimension_numbers<[1], [0], [0], [1], [0, 0, 1, 1], [], []>} : vector<32x32xbf16>, vector<32x8xbf16>, vector<32x8xf32> -> vector<32x8xf32>
    %c0_20 = arith.constant 0 : index
    %c0_21 = arith.constant 0 : index
    %52 = vector.load %arg14[%c0_20, %c0_21] : memref<64x16xf32, #tpu.memory_space<vmem>>, vector<32x8xf32>
    tpu.vector_store %arg14[%c0_20, %c0_21], %51 {strides = array<i32>} : memref<64x16xf32, #tpu.memory_space<vmem>>, vector<32x8xf32>,
    %53 = vector.extract_strided_slice %27 {offsets = [0, 8], sizes = [32, 8], strides = [1, 1]} : vector<64x48xf32> to vector<32x8xf32>
    %54 = vector.extract_strided_slice %27 {offsets = [0, 24], sizes = [32, 8], strides = [1, 1]} : vector<64x48xf32> to vector<32x8xf32>
    %55 = vector.extract_strided_slice %27 {offsets = [0, 40], sizes = [32, 8], strides = [1, 1]} : vector<64x48xf32> to vector<32x8xf32>
    %56 = arith.truncf %53 : vector<32x8xf32> to vector<32x8xbf16>
    %57 = arith.truncf %54 : vector<32x8xf32> to vector<32x8xbf16>
    %cst_22 = arith.constant dense<0.000000e+00> : vector<32x32xf32>
    %58 = tpu.matmul %56, %57, %cst_22 {dimension_numbers = #tpu.dot_dimension_numbers<[1], [1], [0], [0], [0, 0, 1, 0], [], []>} : vector<32x8xbf16>, vector<32x8xbf16>, vector<32x32xf32> -> vector<32x32xf32>
    %cst_23 = arith.constant 0.353553385 : f32
    %59 = vector.broadcast %cst_23 : f32 to vector<32x32xf32>
    %60 = arith.mulf %58, %59 : vector<32x32xf32>
    %c1 = arith.constant 1 : index
    %c0_24 = arith.constant 0 : index
    %c0_25 = arith.constant 0 : index
    %61 = vector.load %arg6[%c1, %c0_24, %c0_25] : memref<2x32x32xf32, #tpu.memory_space<vmem>>, vector<1x32x32xf32>
    %62 = vector.shape_cast %61 : vector<1x32x32xf32> to vector<32x32xf32>
    %63 = arith.addf %60, %62 : vector<32x32xf32>
    %cst_26 = arith.constant dense<0xFF800000> : vector<32xf32>
    %64 = vector.multi_reduction <maximumf>, %63, %cst_26 [1] : vector<32x32xf32> to vector<32xf32>
    %65 = vector.shape_cast %64 : vector<32xf32> to vector<32x1xf32>
    %66 = vector.broadcast %65 : vector<32x1xf32> to vector<32x32xf32>
    %67 = arith.subf %63, %66 : vector<32x32xf32>
    %68 = math.exp %67 : vector<32x32xf32>
    %cst_27 = arith.constant dense<0.000000e+00> : vector<32xf32>
    %69 = vector.multi_reduction <add>, %68, %cst_27 [1] : vector<32x32xf32> to vector<32xf32>
    %70 = vector.shape_cast %69 : vector<32xf32> to vector<32x1xf32>
    %71 = tpu.reciprocal %70 {approx = true} : vector<32x1xf32> -> vector<32x1xf32>
    %72 = vector.broadcast %71 : vector<32x1xf32> to vector<32x32xf32>
    %73 = arith.mulf %68, %72 : vector<32x32xf32>
    %74 = arith.truncf %73 : vector<32x32xf32> to vector<32x32xbf16>
    %75 = arith.truncf %55 : vector<32x8xf32> to vector<32x8xbf16>
    %cst_28 = arith.constant dense<0.000000e+00> : vector<32x8xf32>
    %76 = tpu.matmul %74, %75, %cst_28 {dimension_numbers = #tpu.dot_dimension_numbers<[1], [0], [0], [1], [0, 0, 1, 1], [], []>} : vector<32x32xbf16>, vector<32x8xbf16>, vector<32x8xf32> -> vector<32x8xf32>
    %c0_29 = arith.constant 0 : index
    %c8 = arith.constant 8 : index
    %77 = vector.load %arg14[%c0_29, %c8] : memref<64x16xf32, #tpu.memory_space<vmem>>, vector<32x8xf32>
    tpu.vector_store %arg14[%c0_29, %c8], %76 {strides = array<i32>} : memref<64x16xf32, #tpu.memory_space<vmem>>, vector<32x8xf32>,
    %78 = vector.extract_strided_slice %27 {offsets = [32, 0], sizes = [32, 8], strides = [1, 1]} : vector<64x48xf32> to vector<32x8xf32>
    %79 = vector.extract_strided_slice %27 {offsets = [32, 16], sizes = [32, 8], strides = [1, 1]} : vector<64x48xf32> to vector<32x8xf32>
    %80 = vector.extract_strided_slice %27 {offsets = [32, 32], sizes = [32, 8], strides = [1, 1]} : vector<64x48xf32> to vector<32x8xf32>
    %81 = arith.truncf %78 : vector<32x8xf32> to vector<32x8xbf16>
    %82 = arith.truncf %79 : vector<32x8xf32> to vector<32x8xbf16>
    %cst_30 = arith.constant dense<0.000000e+00> : vector<32x32xf32>
    %83 = tpu.matmul %81, %82, %cst_30 {dimension_numbers = #tpu.dot_dimension_numbers<[1], [1], [0], [0], [0, 0, 1, 0], [], []>} : vector<32x8xbf16>, vector<32x8xbf16>, vector<32x32xf32> -> vector<32x32xf32>
    %cst_31 = arith.constant 0.353553385 : f32
    %84 = vector.broadcast %cst_31 : f32 to vector<32x32xf32>
    %85 = arith.mulf %83, %84 : vector<32x32xf32>
    %c0_32 = arith.constant 0 : index
    %c0_33 = arith.constant 0 : index
    %c0_34 = arith.constant 0 : index
    %86 = vector.load %arg6[%c0_32, %c0_33, %c0_34] : memref<2x32x32xf32, #tpu.memory_space<vmem>>, vector<1x32x32xf32>
    %87 = vector.shape_cast %86 : vector<1x32x32xf32> to vector<32x32xf32>
    %88 = arith.addf %85, %87 : vector<32x32xf32>
    %cst_35 = arith.constant dense<0xFF800000> : vector<32xf32>
    %89 = vector.multi_reduction <maximumf>, %88, %cst_35 [1] : vector<32x32xf32> to vector<32xf32>
    %90 = vector.shape_cast %89 : vector<32xf32> to vector<32x1xf32>
    %91 = vector.broadcast %90 : vector<32x1xf32> to vector<32x32xf32>
    %92 = arith.subf %88, %91 : vector<32x32xf32>
    %93 = math.exp %92 : vector<32x32xf32>
    %cst_36 = arith.constant dense<0.000000e+00> : vector<32xf32>
    %94 = vector.multi_reduction <add>, %93, %cst_36 [1] : vector<32x32xf32> to vector<32xf32>
    %95 = vector.shape_cast %94 : vector<32xf32> to vector<32x1xf32>
    %96 = tpu.reciprocal %95 {approx = true} : vector<32x1xf32> -> vector<32x1xf32>
    %97 = vector.broadcast %96 : vector<32x1xf32> to vector<32x32xf32>
    %98 = arith.mulf %93, %97 : vector<32x32xf32>
    %99 = arith.truncf %98 : vector<32x32xf32> to vector<32x32xbf16>
    %100 = arith.truncf %80 : vector<32x8xf32> to vector<32x8xbf16>
    %cst_37 = arith.constant dense<0.000000e+00> : vector<32x8xf32>
    %101 = tpu.matmul %99, %100, %cst_37 {dimension_numbers = #tpu.dot_dimension_numbers<[1], [0], [0], [1], [0, 0, 1, 1], [], []>} : vector<32x32xbf16>, vector<32x8xbf16>, vector<32x8xf32> -> vector<32x8xf32>
    %c32 = arith.constant 32 : index
    %c0_38 = arith.constant 0 : index
    %102 = vector.load %arg14[%c32, %c0_38] : memref<64x16xf32, #tpu.memory_space<vmem>>, vector<32x8xf32>
    tpu.vector_store %arg14[%c32, %c0_38], %101 {strides = array<i32>} : memref<64x16xf32, #tpu.memory_space<vmem>>, vector<32x8xf32>,
    %103 = vector.extract_strided_slice %27 {offsets = [32, 8], sizes = [32, 8], strides = [1, 1]} : vector<64x48xf32> to vector<32x8xf32>
    %104 = vector.extract_strided_slice %27 {offsets = [32, 24], sizes = [32, 8], strides = [1, 1]} : vector<64x48xf32> to vector<32x8xf32>
    %105 = vector.extract_strided_slice %27 {offsets = [32, 40], sizes = [32, 8], strides = [1, 1]} : vector<64x48xf32> to vector<32x8xf32>
    %106 = arith.truncf %103 : vector<32x8xf32> to vector<32x8xbf16>
    %107 = arith.truncf %104 : vector<32x8xf32> to vector<32x8xbf16>
    %cst_39 = arith.constant dense<0.000000e+00> : vector<32x32xf32>
    %108 = tpu.matmul %106, %107, %cst_39 {dimension_numbers = #tpu.dot_dimension_numbers<[1], [1], [0], [0], [0, 0, 1, 0], [], []>} : vector<32x8xbf16>, vector<32x8xbf16>, vector<32x32xf32> -> vector<32x32xf32>
    %cst_40 = arith.constant 0.353553385 : f32
    %109 = vector.broadcast %cst_40 : f32 to vector<32x32xf32>
    %110 = arith.mulf %108, %109 : vector<32x32xf32>
    %c1_41 = arith.constant 1 : index
    %c0_42 = arith.constant 0 : index
    %c0_43 = arith.constant 0 : index
    %111 = vector.load %arg6[%c1_41, %c0_42, %c0_43] : memref<2x32x32xf32, #tpu.memory_space<vmem>>, vector<1x32x32xf32>
    %112 = vector.shape_cast %111 : vector<1x32x32xf32> to vector<32x32xf32>
    %113 = arith.addf %110, %112 : vector<32x32xf32>
    %cst_44 = arith.constant dense<0xFF800000> : vector<32xf32>
    %114 = vector.multi_reduction <maximumf>, %113, %cst_44 [1] : vector<32x32xf32> to vector<32xf32>
    %115 = vector.shape_cast %114 : vector<32xf32> to vector<32x1xf32>
    %116 = vector.broadcast %115 : vector<32x1xf32> to vector<32x32xf32>
    %117 = arith.subf %113, %116 : vector<32x32xf32>
    %118 = math.exp %117 : vector<32x32xf32>
    %cst_45 = arith.constant dense<0.000000e+00> : vector<32xf32>
    %119 = vector.multi_reduction <add>, %118, %cst_45 [1] : vector<32x32xf32> to vector<32xf32>
    %120 = vector.shape_cast %119 : vector<32xf32> to vector<32x1xf32>
    %121 = tpu.reciprocal %120 {approx = true} : vector<32x1xf32> -> vector<32x1xf32>
    %122 = vector.broadcast %121 : vector<32x1xf32> to vector<32x32xf32>
    %123 = arith.mulf %118, %122 : vector<32x32xf32>
    %124 = arith.truncf %123 : vector<32x32xf32> to vector<32x32xbf16>
    %125 = arith.truncf %105 : vector<32x8xf32> to vector<32x8xbf16>
    %cst_46 = arith.constant dense<0.000000e+00> : vector<32x8xf32>
    %126 = tpu.matmul %124, %125, %cst_46 {dimension_numbers = #tpu.dot_dimension_numbers<[1], [0], [0], [1], [0, 0, 1, 1], [], []>} : vector<32x32xbf16>, vector<32x8xbf16>, vector<32x8xf32> -> vector<32x8xf32>
    %c32_47 = arith.constant 32 : index
    %c8_48 = arith.constant 8 : index
    %127 = vector.load %arg14[%c32_47, %c8_48] : memref<64x16xf32, #tpu.memory_space<vmem>>, vector<32x8xf32>
    tpu.vector_store %arg14[%c32_47, %c8_48], %126 {strides = array<i32>} : memref<64x16xf32, #tpu.memory_space<vmem>>, vector<32x8xf32>,
    %c0_49 = arith.constant 0 : index
    %c0_50 = arith.constant 0 : index
    %128 = vector.load %arg14[%c0_49, %c0_50] : memref<64x16xf32, #tpu.memory_space<vmem>>, vector<64x16xf32>
    %129 = arith.truncf %128 : vector<64x16xf32> to vector<64x16xbf16>
    %c0_51 = arith.constant 0 : index
    %c0_52 = arith.constant 0 : index
    %130 = vector.load %arg4[%c0_51, %c0_52] : memref<16x16xbf16, #tpu.memory_space<vmem>>, vector<16x16xbf16>
    %cst_53 = arith.constant dense<0.000000e+00> : vector<64x16xf32>
    %131 = tpu.matmul %129, %130, %cst_53 {dimension_numbers = #tpu.dot_dimension_numbers<[1], [1], [0], [0], [0, 0, 1, 0], [], []>} : vector<64x16xbf16>, vector<16x16xbf16>, vector<64x16xf32> -> vector<64x16xf32>
    %c0_54 = arith.constant 0 : index
    %c0_55 = arith.constant 0 : index
    %132 = vector.load %arg5[%c0_54, %c0_55] : memref<1x16xf32, #tpu.memory_space<vmem>>, vector<1x16xf32>
    %133 = vector.broadcast %132 : vector<1x16xf32> to vector<64x16xf32>
    %134 = arith.addf %131, %133 : vector<64x16xf32>
    %135 = arith.addf %0, %134 : vector<64x16xf32>
    %c0_56 = arith.constant 0 : index
    %c0_57 = arith.constant 0 : index
    %136 = vector.load %arg7[%c0_56, %c0_57] : memref<1x16xf32, #tpu.memory_space<vmem>>, vector<1x16xf32>
    %c0_58 = arith.constant 0 : index
    %c0_59 = arith.constant 0 : index
    %137 = vector.load %arg8[%c0_58, %c0_59] : memref<1x16xf32, #tpu.memory_space<vmem>>, vector<1x16xf32>
    %cst_60 = arith.constant dense<0.000000e+00> : vector<64xf32>
    %138 = vector.multi_reduction <add>, %135, %cst_60 [1] : vector<64x16xf32> to vector<64xf32>
    %139 = vector.shape_cast %138 : vector<64xf32> to vector<64x1xf32>
    %cst_61 = arith.constant 1.600000e+01 : f32
    %140 = vector.broadcast %cst_61 : f32 to vector<64x1xf32>
    %141 = arith.divf %139, %140 : vector<64x1xf32>
    %142 = vector.broadcast %141 : vector<64x1xf32> to vector<64x16xf32>
    %143 = arith.subf %135, %142 : vector<64x16xf32>
    %144 = arith.mulf %143, %143 : vector<64x16xf32>
    %cst_62 = arith.constant dense<0.000000e+00> : vector<64xf32>
    %145 = vector.multi_reduction <add>, %144, %cst_62 [1] : vector<64x16xf32> to vector<64xf32>
    %146 = vector.shape_cast %145 : vector<64xf32> to vector<64x1xf32>
    %cst_63 = arith.constant 1.600000e+01 : f32
    %147 = vector.broadcast %cst_63 : f32 to vector<64x1xf32>
    %148 = arith.divf %146, %147 : vector<64x1xf32>
    %149 = vector.broadcast %141 : vector<64x1xf32> to vector<64x16xf32>
    %150 = arith.subf %135, %149 : vector<64x16xf32>
    %cst_64 = arith.constant 9.99999974E-6 : f32
    %151 = vector.broadcast %cst_64 : f32 to vector<64x1xf32>
    %152 = arith.addf %148, %151 : vector<64x1xf32>
    %153 = math.rsqrt %152 : vector<64x1xf32>
    %154 = vector.broadcast %153 : vector<64x1xf32> to vector<64x16xf32>
    %155 = arith.mulf %150, %154 : vector<64x16xf32>
    %156 = vector.broadcast %136 : vector<1x16xf32> to vector<64x16xf32>
    %157 = arith.mulf %155, %156 : vector<64x16xf32>
    %158 = vector.broadcast %137 : vector<1x16xf32> to vector<64x16xf32>
    %159 = arith.addf %157, %158 : vector<64x16xf32>
    %160 = arith.truncf %159 : vector<64x16xf32> to vector<64x16xbf16>
    %c0_65 = arith.constant 0 : index
    %c0_66 = arith.constant 0 : index
    %161 = vector.load %arg9[%c0_65, %c0_66] : memref<64x16xbf16, #tpu.memory_space<vmem>>, vector<64x16xbf16>
    %cst_67 = arith.constant dense<0.000000e+00> : vector<64x64xf32>
    %162 = tpu.matmul %160, %161, %cst_67 {dimension_numbers = #tpu.dot_dimension_numbers<[1], [1], [0], [0], [0, 0, 1, 0], [], []>} : vector<64x16xbf16>, vector<64x16xbf16>, vector<64x64xf32> -> vector<64x64xf32>
    %c0_68 = arith.constant 0 : index
    %c0_69 = arith.constant 0 : index
    %163 = vector.load %arg10[%c0_68, %c0_69] : memref<1x64xf32, #tpu.memory_space<vmem>>, vector<1x64xf32>
    %164 = vector.broadcast %163 : vector<1x64xf32> to vector<64x64xf32>
    %165 = arith.addf %162, %164 : vector<64x64xf32>
    %cst_70 = arith.constant 5.000000e-01 : f32
    %166 = vector.broadcast %cst_70 : f32 to vector<64x64xf32>
    %167 = arith.mulf %166, %165 : vector<64x64xf32>
    %cst_71 = arith.constant 4.471500e-02 : f32
    %168 = vector.broadcast %cst_71 : f32 to vector<64x64xf32>
    %169 = arith.mulf %168, %165 : vector<64x64xf32>
    %170 = arith.mulf %169, %165 : vector<64x64xf32>
    %171 = arith.mulf %170, %165 : vector<64x64xf32>
    %172 = arith.addf %165, %171 : vector<64x64xf32>
    %cst_72 = arith.constant 0.797884583 : f32
    %173 = vector.broadcast %cst_72 : f32 to vector<64x64xf32>
    %174 = arith.mulf %173, %172 : vector<64x64xf32>
    %175 = math.tanh %174 : vector<64x64xf32>
    %cst_73 = arith.constant 1.000000e+00 : f32
    %176 = vector.broadcast %cst_73 : f32 to vector<64x64xf32>
    %177 = arith.addf %176, %175 : vector<64x64xf32>
    %178 = arith.mulf %167, %177 : vector<64x64xf32>
    %179 = arith.truncf %178 : vector<64x64xf32> to vector<64x64xbf16>
    %c0_74 = arith.constant 0 : index
    %c0_75 = arith.constant 0 : index
    %180 = vector.load %arg11[%c0_74, %c0_75] : memref<16x64xbf16, #tpu.memory_space<vmem>>, vector<16x64xbf16>
    %cst_76 = arith.constant dense<0.000000e+00> : vector<64x16xf32>
    %181 = tpu.matmul %179, %180, %cst_76 {dimension_numbers = #tpu.dot_dimension_numbers<[1], [1], [0], [0], [0, 0, 1, 0], [], []>} : vector<64x64xbf16>, vector<16x64xbf16>, vector<64x16xf32> -> vector<64x16xf32>
    %c0_77 = arith.constant 0 : index
    %c0_78 = arith.constant 0 : index
    %182 = vector.load %arg12[%c0_77, %c0_78] : memref<1x16xf32, #tpu.memory_space<vmem>>, vector<1x16xf32>
    %183 = vector.broadcast %182 : vector<1x16xf32> to vector<64x16xf32>
    %184 = arith.addf %181, %183 : vector<64x16xf32>
    %185 = arith.addf %135, %184 : vector<64x16xf32>
    %c0_79 = arith.constant 0 : index
    %c0_80 = arith.constant 0 : index
    %186 = vector.load %arg13[%c0_79, %c0_80] : memref<64x16xf32, #tpu.memory_space<vmem>>, vector<64x16xf32>
    tpu.vector_store %arg13[%c0_79, %c0_80], %185 {strides = array<i32>} : memref<64x16xf32, #tpu.memory_space<vmem>>, vector<64x16xf32>,
    return
  }
}

</mosaic_0001>

<bundles_post_ra>
// kernel: transformer_forward.1
= control target key start
LH: loop header
LB: loop body
LE: loop exit
PB: predicated region body
PF: predicated region fallthrough
CT: control target
= control target key end

     0   :  { %vm56_vm0 = vcmask 130048   ;;  %s2719_s0 = inlined_call_operand.vmem [shape: f32[64,16], index: 0, kind: input, shape index: {}]   ;;  %s2720_s1 = inlined_call_operand.vmem [shape: f32[1,16], index: 1, kind: input, shape index: {}]   ;;  %s2721_s2 = inlined_call_operand.vmem [shape: f32[1,16], index: 2, kind: input, shape index: {}]   ;;  %s2722_s3 = inlined_call_operand.vmem [shape: bf16[48,16], index: 3, kind: input, shape index: {}]   ;;  %s2723_s4 = inlined_call_operand.vmem [shape: bf16[16,16], index: 4, kind: input, shape index: {}]   ;;  %s2724_s5 = inlined_call_operand.vmem [shape: f32[1,16], index: 5, kind: input, shape index: {}]   ;;  %s2725_s6 = inlined_call_operand.vmem [shape: f32[2,32,32], index: 6, kind: input, shape index: {}]   ;;  %s2726_s7 = inlined_call_operand.vmem [shape: f32[1,16], index: 7, kind: input, shape index: {}]   ;;  %s2727_s8 = inlined_call_operand.vmem [shape: f32[1,16], index: 8, kind: input, shape index: {}]   ;;  %s2728_s9 = inlined_call_operand.vmem [shape: bf16[64,16], index: 9, kind: input, shape index: {}]   ;;  %s2729_s10 = inlined_call_operand.vmem [shape: f32[1,64], index: 10, kind: input, shape index: {}]   ;;  %s2730_s11 = inlined_call_operand.vmem [shape: bf16[16,64], index: 11, kind: input, shape index: {}]   ;;  %s2731_s12 = inlined_call_operand.vmem [shape: f32[1,16], index: 12, kind: input, shape index: {}]   ;;  %s2732_s13 = inlined_call_operand.hbm [shape: f32[64,16], index: 13, kind: output, shape index: {}]  }
   0x1   :  { %v46_v0 = vld [vmem:[%s2719_s0] sm:$0xff]  ;;  %v48_v1 = vld [vmem:[%s2719_s0 + $0x10] sm:$0xff]  ;;  %v47_v2 = vld [vmem:[%s2719_s0 + $0x8] sm:$0xff] }
   0x2   :  { %v57_v3 = vsel %vm56_vm0, %v46_v0, 0.0  ;;  %v63_v4 = vsel %vm56_vm0, %v48_v1, 0.0  ;;  %v49_v5 = vld [vmem:[%s2719_s0 + $0x18] sm:$0xff]  ;;  %v60_v6 = vsel %vm56_vm0, %v47_v2, 0.0 }
   0x3   :  { %58 = vadd.xlane.f32.xlu0 %v57_v3  ;;  %64 = vadd.xlane.f32.xlu1 %v63_v4  ;;  %v66_v7 = vsel %vm56_vm0, %v49_v5, 0.0 }
   0x7   :  { %61 = vadd.xlane.f32.xlu0 %v60_v6  ;;  %67 = vadd.xlane.f32.xlu1 %v66_v7 }
   0x8   :  { %18 = vsyncpa [#allocation4], 0  ;;  %v50_v26 = vld [vmem:[%s2719_s0 + $0x20] sm:$0xff]  ;;  %v51_v30 = vld [vmem:[%s2719_s0 + $0x28] sm:$0xff]  ;;  %vm309_vm1 = vcmask 64512   ;;  %s2089_s16 = smov 104  }
   0x9   :  { %v69_v29 = vsel %vm56_vm0, %v50_v26, 0.0  ;;  %v52_v31 = vld [vmem:[%s2719_s0 + $0x30] sm:$0xff]  ;;  %v72_v32 = vsel %vm56_vm0, %v51_v30, 0.0  ;;  %v53_v34 = vld [vmem:[%s2719_s0 + $0x38] sm:$0xff]  ;;  %v1937_v38 = vld [vmem:[%s2722_s3 + $0x8] sm:$0xff]   ;;  %vm383_vm2 = vcmask 261120  }
   0xa   :  { %v75_v33 = vsel %vm56_vm0, %v52_v31, 0.0  ;;  %v78_v35 = vsel %vm56_vm0, %v53_v34, 0.0  ;;  %v1936_v36 = vld [vmem:[%s2722_s3 + $0x10] sm:$0xff]   ;;  %v231_v39 = vsel %vm56_vm0, %v1937_v38, 0  ;;  %v1938_v40 = vld [vmem:[%s2722_s3] sm:$0xff]   ;;  %s2090_s15 = smov 96  }
   0xb   :  { %1911 = vmatprep.subr.msk.bf16.mxu0 %vm56_vm0, %v1936_v36  ;;  %v234_v37 = vsel %vm56_vm0, %v1936_v36, 0  ;;  %v228_v41 = vsel %vm56_vm0, %v1938_v40, 0  ;;  %vm700_vm3 = vcmask 130112   ;;  %vm1571_vm4 = vcmask 523264  }
   0xc   :  { %1798 = vmatpush3.bf16.xpose.msra.mxu0 %v234_v37 }
   0xd   :  { %1912 = vmatprep.subr.msk.bf16.mxu0 %vm56_vm0, %v1937_v38 }
  0x14   :  { %1800 = vmatpush3.bf16.xpose.msra.mxu0 %v231_v39 }
  0x15   :  { %1913 = vmatprep.subr.msk.bf16.mxu0 %vm56_vm0, %v1938_v40 }
  0x1c   :  { %1802 = vmatpush3.bf16.xpose.msra.mxu0 %v228_v41 }
  0x8c   :  { %v59_v8 = vpop.xlane.xlu0 %58  ;;  %v65_v9 = vpop.xlane.xlu1 %64 }
  0x8d   :  { %v82_v10 = vmul.f32 0.0625, %v59_v8  ;;  %v84_v11 = vmul.f32 0.0625, %v65_v9 }
  0x8f   :  { %v2181_v12 = vsub.f32 %v46_v0, %v82_v10  ;;  %v2183_v13 = vsub.f32 %v48_v1, %v84_v11  ;;  %v1684_v10 = vld [vmem:[%s2720_s1] ss:$0 sm:$0xff]  ;;  %s2087_s1 = smov 112  }
  0x90   :  { %v62_v14 = vpop.xlane.xlu0 %61  ;;  %v68_v15 = vpop.xlane.xlu1 %67 }
  0x91   :  { %v83_v16 = vmul.f32 0.0625, %v62_v14  ;;  %v85_v17 = vmul.f32 0.0625, %v68_v15  ;;  %v98_v18 = vmul.f32 %v2181_v12, %v2181_v12  ;;  %v100_v19 = vmul.f32 %v2183_v13, %v2183_v13 }
  0x93   :  { %v2189_v20 = vsub.f32 %v47_v2, %v83_v16  ;;  %v2191_v21 = vsub.f32 %v49_v5, %v85_v17  ;;  %v106_v22 = vsel %vm56_vm0, %v98_v18, 0.0  ;;  %v112_v23 = vsel %vm56_vm0, %v100_v19, 0.0 }
  0x94   :  { %107 = vadd.xlane.f32.xlu0 %v106_v22 }
  0x95   :  { %v99_v24 = vmul.f32 %v2189_v20, %v2189_v20  ;;  %v101_v25 = vmul.f32 %v2191_v21, %v2191_v21 }
  0x97   :  { %v109_v27 = vsel %vm56_vm0, %v99_v24, 0.0  ;;  %v115_v28 = vsel %vm56_vm0, %v101_v25, 0.0 }
  0x98   :  { %113 = vadd.xlane.f32.xlu0 %v112_v23  ;;  %110 = vadd.xlane.f32.xlu1 %v109_v27 }
  0x9c   :  { %116 = vadd.xlane.f32.xlu1 %v115_v28  ;;  %70 = vadd.xlane.f32.xlu0 %v69_v29 }
  0xa0   :  { %73 = vadd.xlane.f32.xlu1 %v72_v32  ;;  %76 = vadd.xlane.f32.xlu0 %v75_v33 }
  0xa4   :  { %79 = vadd.xlane.f32.xlu1 %v78_v35 }
 0x11d   :  { %v108_v42 = vpop.xlane.xlu0 %107 }
 0x11e   :  { %v130_v43 = vmul.f32 0.0625, %v108_v42 }
 0x120   :  { %v138_v44 = vadd.f32 1e-05, %v130_v43 }
 0x121   :  { %v111_v45 = vpop.xlane.xlu1 %110  ;;  %v114_v46 = vpop.xlane.xlu0 %113 }
 0x122   :  { %1945 = vrsqrt.f32 %v138_v44  ;;  %v131_v47 = vmul.f32 0.0625, %v111_v45  ;;  %v132_v48 = vmul.f32 0.0625, %v114_v46 }
 0x124   :  { %v139_v49 = vadd.f32 1e-05, %v131_v47  ;;  %v140_v50 = vadd.f32 1e-05, %v132_v48 }
 0x125   :  { %v117_v51 = vpop.xlane.xlu1 %116  ;;  %v71_v52 = vpop.xlane.xlu0 %70 }
 0x126   :  { %1947 = vrsqrt.f32 %v139_v49  ;;  %v133_v53 = vmul.f32 0.0625, %v117_v51  ;;  %v86_v54 = vmul.f32 0.0625, %v71_v52 }
 0x127   :  { %1949 = vrsqrt.f32 %v140_v50 }
 0x128   :  { %v141_v55 = vadd.f32 1e-05, %v133_v53  ;;  %v94_v56 = vsub.f32 %v50_v26, %v86_v54 }
 0x129   :  { %v74_v57 = vpop.xlane.xlu1 %73  ;;  %v77_v58 = vpop.xlane.xlu0 %76 }
 0x12a   :  { %1951 = vrsqrt.f32 %v141_v55  ;;  %v87_v59 = vmul.f32 0.0625, %v74_v57  ;;  %v88_v60 = vmul.f32 0.0625, %v77_v58  ;;  %v102_v61 = vmul.f32 %v94_v56, %v94_v56 }
 0x12c   :  { %v95_v62 = vsub.f32 %v51_v30, %v87_v59  ;;  %v96_v63 = vsub.f32 %v52_v31, %v88_v60  ;;  %v118_v0 = vsel %vm56_vm0, %v102_v61, 0.0 }
 0x12d   :  { %v80_v1 = vpop.xlane.xlu1 %79  ;;  %119 = vadd.xlane.f32.xlu0 %v118_v0 }
 0x12e   :  { %v89_v2 = vmul.f32 0.0625, %v80_v1  ;;  %v103_v3 = vmul.f32 %v95_v62, %v95_v62  ;;  %v104_v4 = vmul.f32 %v96_v63, %v96_v63 }
 0x12f   :  { %v1946_v5 = vpop.eup %1945 }
 0x130   :  { %v154_v6 = vmul.f32 %v1946_v5, %v2181_v12  ;;  %v97_v7 = vsub.f32 %v53_v34, %v89_v2  ;;  %v121_v8 = vsel %vm56_vm0, %v103_v3, 0.0  ;;  %v124_v9 = vsel %vm56_vm0, %v104_v4, 0.0  ;;  %v1685_v12 = vld [vmem:[%s2721_s2] ss:$0 sm:$0xff]  ;;  %s2088_s2 = smov 120  }
 0x131   :  { %122 = vadd.xlane.f32.xlu1 %v121_v8  ;;  %125 = vadd.xlane.f32.xlu0 %v124_v9 }
 0x132   :  { %v105_v11 = vmul.f32 %v97_v7, %v97_v7  ;;  %v168_v17 = vmul.f32 %v1684_v10, %v154_v6 }
 0x133   :  { %v1948_v14 = vpop.eup %1947 }
 0x134   :  { %v1950_v15 = vpop.eup %1949  ;;  %v155_v16 = vmul.f32 %v1948_v14, %v2189_v20  ;;  %v127_v18 = vsel %vm56_vm0, %v105_v11, 0.0  ;;  %v182_v24 = vadd.f32 %v1685_v12, %v168_v17 }
 0x135   :  { %v156_v19 = vmul.f32 %v1950_v15, %v2183_v13  ;;  %128 = vadd.xlane.f32.xlu1 %v127_v18 }
 0x136   :  { %v169_v22 = vmul.f32 %v1684_v10, %v155_v16 }
 0x137   :  { %v1952_v23 = vpop.eup %1951  ;;  %v170_v27 = vmul.f32 %v1684_v10, %v156_v19  ;;  %v2287_v19 = vld [vmem:[%s2725_s6] sm:$0xff] }
 0x138   :  { %v183_v25 = vadd.f32 %v1685_v12, %v169_v22  ;;  %v157_v26 = vmul.f32 %v1952_v23, %v2191_v21 }
 0x139   :  { %v184_v20 = vadd.f32 %v1685_v12, %v170_v27 }
 0x13a   :  { %v190_v28 = vpack.c.bf16 %v183_v25, %v182_v24  ;;  %v171_v29 = vmul.f32 %v1684_v10, %v157_v26  ;;  %v2294_v26 = vld [vmem:[%s2725_s6 + $0x10] sm:$0xff] }
 0x13c   :  { %1803 = vmatprep.mubr.msk.bf16.mxu0 %vm56_vm0, %v190_v28  ;;  %v185_v30 = vadd.f32 %v1685_v12, %v171_v29 }
 0x13e   :  { %v191_v31 = vpack.c.bf16 %v185_v30, %v184_v20  ;;  %v2302_v20 = vld [vmem:[%s2725_s6 + $0x8] sm:$0xff] }
 0x140   :  { %1804 = vmatmul.mubr.msk.bf16.vlgmr.msra.gmra.mxu0 %vm56_vm0, %v191_v31 }
 0x1b6   :  { %v120_v32 = vpop.xlane.xlu0 %119 }
 0x1b7   :  { %v134_v33 = vmul.f32 0.0625, %v120_v32 }
 0x1b9   :  { %v142_v13 = vadd.f32 1e-05, %v134_v33 }
 0x1ba   :  { %v123_v34 = vpop.xlane.xlu1 %122  ;;  %v126_v35 = vpop.xlane.xlu0 %125 }
 0x1bb   :  { %v135_v36 = vmul.f32 0.0625, %v123_v34  ;;  %1953 = vrsqrt.f32 %v142_v13  ;;  %v136_v37 = vmul.f32 0.0625, %v126_v35  ;;  %v2310_v34 = vld [vmem:[%s2725_s6 + $0x18] sm:$0xff] }
 0x1bd   :  { %v143_v38 = vadd.f32 1e-05, %v135_v36  ;;  %v144_v21 = vadd.f32 1e-05, %v136_v37 }
 0x1be   :  { %v129_v39 = vpop.xlane.xlu1 %128 }
 0x1bf   :  { %1955 = vrsqrt.f32 %v143_v38  ;;  %v137_v40 = vmul.f32 0.0625, %v129_v39 }
 0x1c0   :  { %1957 = vrsqrt.f32 %v144_v21 }
 0x1c1   :  { %v145_v41 = vadd.f32 1e-05, %v137_v40 }
 0x1c3   :  { %1959 = vrsqrt.f32 %v145_v41  ;;  %v2319_v41 = vld [vmem:[%s2725_s6 + $0x28] sm:$0xff] }
 0x1c8   :  { %v1954_v42 = vpop.eup %1953 }
 0x1c9   :  { %v158_v43 = vmul.f32 %v1954_v42, %v94_v56  ;;  %v2324_v42 = vld [vmem:[%s2725_s6 + $0x20] sm:$0xff] }
 0x1cb   :  { %v172_v44 = vmul.f32 %v1684_v10, %v158_v43 }
 0x1cc   :  { %v1956_v45 = vpop.eup %1955 }
 0x1cd   :  { %v1958_v46 = vpop.eup %1957  ;;  %v159_v47 = vmul.f32 %v1956_v45, %v95_v62  ;;  %v186_v50 = vadd.f32 %v1685_v12, %v172_v44  ;;  %v2329_v45 = vld [vmem:[%s2725_s6 + $0x38] sm:$0xff] }
 0x1ce   :  { %v160_v48 = vmul.f32 %v1958_v46, %v96_v63 }
 0x1cf   :  { %v173_v49 = vmul.f32 %v1684_v10, %v159_v47 }
 0x1d0   :  { %v1960_v51 = vpop.eup %1959  ;;  %v174_v52 = vmul.f32 %v1684_v10, %v160_v48 }
 0x1d1   :  { %v187_v53 = vadd.f32 %v1685_v12, %v173_v49  ;;  %v161_v54 = vmul.f32 %v1960_v51, %v97_v7 }
 0x1d2   :  { %v188_v58 = vadd.f32 %v1685_v12, %v174_v52 }
 0x1d3   :  { %v192_v55 = vpack.c.bf16 %v187_v53, %v186_v50  ;;  %v175_v57 = vmul.f32 %v1684_v10, %v161_v54  ;;  %v2339_v50 = vld [vmem:[%s2725_s6 + $0x30] sm:$0xff]  ;;  %s2091_s6 = smov 88  }
 0x1d5   :  { %1807 = vmatprep.mubr.msk.bf16.mxu0 %vm56_vm0, %v192_v55  ;;  %v189_v59 = vadd.f32 %v1685_v12, %v175_v57 }
 0x1d7   :  { %v193_v60 = vpack.c.bf16 %v189_v59, %v188_v58 }
 0x1d9   :  { %1808 = vmatmul.mubr.msk.bf16.gmra.mxu0 %vm56_vm0, %v193_v60 }
 0x200   :  { %v1805_v56 = vpop.f32.mrf.mxu0 }
 0x202   :  { %v270_v61 = vpop.f32.mrf.mxu0 }
 0x204   :  { %v1806_v0 = vpop.f32.mrf.mxu0 }
 0x205   :  { %v2250_v62 = vpack.c.bf16 %v1806_v0, %v1805_v56 }
 0x206   :  { %v273_v63 = vpop.f32.mrf.mxu0 }
 0x207   :  { %v2252_v1 = vpack.c.bf16 %v273_v63, %v270_v61  ;;  %307 = vrot.lane.b32.xlu0 %v2250_v62, %s2087_s1 }
 0x209   :  { %305 = vrot.lane.b32.xlu1 %v2252_v1, %s2087_s1  ;;  %1815 = vmatprep.mubr.msk.bf16.mxu1 %vm309_vm1, %v2252_v1 }
 0x20b   :  { %495 = vrot.lane.b32.xlu0 %v2252_v1, %s2088_s2 }
 0x20d   :  { %501 = vrot.lane.b32.xlu1 %v2250_v62, %s2089_s16 }
 0x211   :  { %499 = vrot.lane.b32.xlu1 %v2252_v1, %s2089_s16 }
 0x215   :  { %497 = vrot.lane.b32.xlu1 %v2250_v62, %s2088_s2 }
 0x279   :  { %v308_v2 = vpop.permute.xlu0 %307 }
 0x27a   :  { %1914 = vmatprep.subr.msk.bf16.mxu1 %vm309_vm1, %v308_v2  ;;  %v320_v3 = vsel %vm309_vm1, %v308_v2, 0 }
 0x27b   :  { %v306_v4 = vpop.permute.xlu1 %305  ;;  %1812 = vmatpush3.bf16.xpose.msra.mxu1 %v320_v3 }
 0x27c   :  { %1915 = vmatprep.subr.msk.bf16.mxu1 %vm309_vm1, %v306_v4  ;;  %v317_v8 = vsel %vm309_vm1, %v306_v4, 0 }
 0x27d   :  { %v496_v5 = vpop.permute.xlu0 %495 }
 0x27e   :  { %1831 = vmatprep.mubr.msk.bf16.mxu0 %vm309_vm1, %v496_v5 }
 0x27f   :  { %v502_v6 = vpop.permute.xlu1 %501 }
 0x280   :  { %v513_v7 = vsel %vm309_vm1, %v502_v6, 0  ;;  %1916 = vmatprep.subr.msk.bf16.mxu0 %vm309_vm1, %v502_v6 }
 0x281   :  { %1828 = vmatpush3.bf16.xpose.msra.mxu0 %v513_v7 }
 0x283   :  { %v500_v9 = vpop.permute.xlu1 %499  ;;  %1814 = vmatpush3.bf16.xpose.msra.mxu1 %v317_v8 }
 0x284   :  { %1917 = vmatprep.subr.msk.bf16.mxu0 %vm309_vm1, %v500_v9  ;;  %v510_v10 = vsel %vm309_vm1, %v500_v9, 0 }
 0x287   :  { %v498_v11 = vpop.permute.xlu1 %497 }
 0x289   :  { %1830 = vmatpush3.bf16.xpose.msra.mxu0 %v510_v10 }
 0x28a   :  { %1816 = vmatmul.mubr.msk.bf16.vlgmr.msra.gmra.mxu1 %vm309_vm1, %v2250_v62 }
 0x290   :  { %1832 = vmatmul.mubr.msk.bf16.vlgmr.msra.gmra.mxu0 %vm309_vm1, %v498_v11 }
 0x299   :  { %v1809_v14 = vpop.f32.mrf.mxu0 }
 0x29b   :  { %v2280_v15 = vpop.f32.mrf.mxu0 }
 0x29d   :  { %v1810_v16 = vpop.f32.mrf.mxu0 }
 0x29e   :  { %v2282_v17 = vpack.c.bf16 %v1810_v16, %v1809_v14 }
 0x29f   :  { %v2289_v24 = vpop.f32.mrf.mxu0 }
 0x34a   :  { %v1817_v18 = vpop.f32.mrf.mxu1 }
 0x34b   :  { %v373_v22 = vmul.f32 0.35355338, %v1817_v18 }
 0x34c   :  { %v356_v12 = vpop.f32.mrf.mxu1 }
 0x34d   :  { %v371_v23 = vmul.f32 0.35355338, %v356_v12  ;;  %v381_v33 = vadd.f32 %v2294_v26, %v373_v22 }
 0x34e   :  { %v1818_v25 = vpop.f32.mrf.mxu1 }
 0x34f   :  { %v2297_v27 = vadd.f32 %v2287_v19, %v371_v23  ;;  %v374_v30 = vmul.f32 0.35355338, %v1818_v25  ;;  %v390_v38 = vsel %vm383_vm2, %v381_v33, -inf }
 0x350   :  { %v359_v28 = vpop.f32.mrf.mxu1  ;;  %v1833_v29 = vpop.f32.mrf.mxu0 }
 0x351   :  { %v372_v31 = vmul.f32 0.35355338, %v359_v28  ;;  %v384_v32 = vsel %vm383_vm2, %v2297_v27, -inf  ;;  %v382_v39 = vadd.f32 %v2310_v34, %v374_v30  ;;  %v566_v46 = vmul.f32 0.35355338, %v1833_v29 }
 0x352   :  { %385 = vmax.xlane.f32.xlu0 %v384_v32  ;;  %v549_v13 = vpop.f32.mrf.mxu0 }
 0x353   :  { %v380_v35 = vadd.f32 %v2302_v20, %v372_v31  ;;  %v564_v37 = vmul.f32 0.35355338, %v549_v13  ;;  %v393_v47 = vsel %vm383_vm2, %v382_v39, -inf  ;;  %v575_v54 = vadd.f32 %v2339_v50, %v566_v46 }
 0x354   :  { %v1834_v36 = vpop.f32.mrf.mxu0 }
 0x355   :  { %v387_v21 = vsel %vm383_vm2, %v380_v35, -inf  ;;  %v567_v43 = vmul.f32 0.35355338, %v1834_v36  ;;  %v2334_v49 = vadd.f32 %v2324_v42, %v564_v37  ;;  %v583_v57 = vsel %vm383_vm2, %v575_v54, -inf }
 0x356   :  { %391 = vmax.xlane.f32.xlu0 %v390_v38  ;;  %388 = vmax.xlane.f32.xlu1 %v387_v21  ;;  %v552_v40 = vpop.f32.mrf.mxu0  ;;  %v2376_v21 = vpack.c.bf16 %v2289_v24, %v2280_v15 }
 0x357   :  { %v565_v44 = vmul.f32 0.35355338, %v552_v40  ;;  %v576_v52 = vadd.f32 %v2329_v45, %v567_v43  ;;  %v577_v53 = vsel %vm383_vm2, %v2334_v49, -inf }
 0x359   :  { %v574_v48 = vadd.f32 %v2319_v41, %v565_v44  ;;  %v586_v55 = vsel %vm383_vm2, %v576_v52, -inf }
 0x35a   :  { %394 = vmax.xlane.f32.xlu0 %v393_v47 }
 0x35b   :  { %v580_v51 = vsel %vm383_vm2, %v574_v48, -inf }
 0x35c   :  { %581 = vmax.xlane.f32.xlu1 %v580_v51 }
 0x35e   :  { %578 = vmax.xlane.f32.xlu0 %v577_v53 }
 0x360   :  { %587 = vmax.xlane.f32.xlu1 %v586_v55 }
 0x362   :  { %584 = vmax.xlane.f32.xlu0 %v583_v57 }
 0x371   :  { %430 = vrot.lane.b32.xlu1 %v2252_v1, %s2090_s15 }
 0x375   :  { %625 = vrot.lane.b32.xlu1 %v2250_v62, %s2091_s6 }
 0x3db   :  { %v386_v58 = vpop.xlane.xlu0 %385 }
 0x3dc   :  { %v396_v7 = vsub.f32 %v2297_v27, %v386_v58 }
 0x3de   :  { %v400_v18 = vmul.f32 1.442695, %v396_v7 }
 0x3df   :  { %v392_v59 = vpop.xlane.xlu0 %391  ;;  %v389_v56 = vpop.xlane.xlu1 %388 }
 0x3e0   :  { %v398_v60 = vsub.f32 %v381_v33, %v392_v59  ;;  %v397_v4 = vsub.f32 %v380_v35, %v389_v56 }
 0x3e2   :  { %v404_v61 = vmul.f32 1.442695, %v398_v60  ;;  %v402_v9 = vmul.f32 1.442695, %v397_v4 }
 0x3e3   :  { %v395_v0 = vpop.xlane.xlu0 %394 }
 0x3e4   :  { %v399_v63 = vsub.f32 %v382_v39, %v395_v0  ;;  %1961 = vpow2.f32 %v404_v61 }
 0x3e5   :  { %v582_v2 = vpop.xlane.xlu1 %581 }
 0x3e6   :  { %v406_v3 = vmul.f32 1.442695, %v399_v63  ;;  %v590_v11 = vsub.f32 %v574_v48, %v582_v2 }
 0x3e7   :  { %v579_v5 = vpop.xlane.xlu0 %578 }
 0x3e8   :  { %1963 = vpow2.f32 %v406_v3  ;;  %v595_v22 = vmul.f32 1.442695, %v590_v11  ;;  %v589_v39 = vsub.f32 %v2334_v49, %v579_v5 }
 0x3e9   :  { %v588_v6 = vpop.xlane.xlu1 %587 }
 0x3ea   :  { %v592_v8 = vsub.f32 %v576_v52, %v588_v6  ;;  %v593_v40 = vmul.f32 1.442695, %v589_v39 }
 0x3eb   :  { %v585_v10 = vpop.xlane.xlu0 %584 }
 0x3ec   :  { %v599_v14 = vmul.f32 1.442695, %v592_v8  ;;  %v591_v16 = vsub.f32 %v575_v54, %v585_v10 }
 0x3ee   :  { %1965 = vpow2.f32 %v599_v14  ;;  %v597_v12 = vmul.f32 1.442695, %v591_v16 }
 0x3ef   :  { %1967 = vpow2.f32 %v402_v9 }
 0x3f0   :  { %1969 = vpow2.f32 %v597_v12 }
 0x3f1   :  { %v2353_v23 = vpop.eup %1961  ;;  %1971 = vpow2.f32 %v400_v18 }
 0x3f2   :  { %v414_v25 = vsel %vm383_vm2, %v2353_v23, 0.0  ;;  %1973 = vpow2.f32 %v595_v22 }
 0x3f3   :  { %415 = vadd.xlane.f32.xlu0 %v414_v25  ;;  %1975 = vpow2.f32 %v593_v40 }
 0x3f5   :  { %v1964_v27 = vpop.eup %1963 }
 0x3f6   :  { %v417_v28 = vsel %vm383_vm2, %v1964_v27, 0.0 }
 0x3f7   :  { %418 = vadd.xlane.f32.xlu1 %v417_v28 }
 0x3fb   :  { %v2358_v29 = vpop.eup %1965 }
 0x3fc   :  { %v1968_v30 = vpop.eup %1967  ;;  %v610_v31 = vsel %vm383_vm2, %v2358_v29, 0.0 }
 0x3fd   :  { %v2362_v32 = vpop.eup %1969  ;;  %611 = vadd.xlane.f32.xlu1 %v610_v31  ;;  %v411_v35 = vsel %vm383_vm2, %v1968_v30, 0.0 }
 0x3fe   :  { %v607_v33 = vsel %vm383_vm2, %v2362_v32, 0.0  ;;  %v1972_v13 = vpop.eup %1971 }
 0x3ff   :  { %608 = vadd.xlane.f32.xlu0 %v607_v33  ;;  %v2367_v36 = vpop.eup %1973  ;;  %v408_v37 = vsel %vm383_vm2, %v1972_v13, 0.0 }
 0x400   :  { %v604_v38 = vsel %vm383_vm2, %v2367_v36, 0.0 }
 0x401   :  { %412 = vadd.xlane.f32.xlu1 %v411_v35 }
 0x403   :  { %409 = vadd.xlane.f32.xlu0 %v408_v37 }
 0x405   :  { %605 = vadd.xlane.f32.xlu1 %v604_v38 }
 0x416   :  { %623 = vrot.lane.b32.xlu1 %v2252_v1, %s2091_s6  ;;  %v1976_v1 = vpop.eup %1975 }
 0x417   :  { %v601_v15 = vsel %vm383_vm2, %v1976_v1, 0.0 }
 0x419   :  { %432 = vrot.lane.b32.xlu0 %v2250_v62, %s2090_s15  ;;  %v431_v62 = vpop.permute.xlu1 %430 }
 0x41a   :  { %709 = vrot.lane.b32.xlu1 %v2376_v21, %s2087_s1 }
 0x41d   :  { %v626_v24 = vpop.permute.xlu1 %625 }
 0x41e   :  { %901 = vrot.lane.b32.xlu1 %v2376_v21, %s2089_s16 }
 0x422   :  { %899 = vrot.lane.b32.xlu1 %v2282_v17, %s2088_s2 }
 0x438   :  { %602 = vadd.xlane.f32.xlu0 %v601_v15 }
 0x44e   :  { %711 = vrot.lane.b32.xlu0 %v2282_v17, %s2087_s1  ;;  %s2092_s1 = smov 8  }
 0x452   :  { %903 = vrot.lane.b32.xlu0 %v2282_v17, %s2089_s16 }
 0x456   :  { %897 = vrot.lane.b32.xlu0 %v2376_v21, %s2088_s2 }
 0x47c   :  { %v416_v44 = vpop.xlane.xlu0 %415 }
 0x480   :  { %v419_v43 = vpop.xlane.xlu1 %418 }
 0x481   :  { %1977 = vrcp.f32 %v419_v43 }
 0x486   :  { %v612_v46 = vpop.xlane.xlu1 %611 }
 0x488   :  { %v609_v47 = vpop.xlane.xlu0 %608 }
 0x48a   :  { %v413_v48 = vpop.xlane.xlu1 %412 }
 0x48b   :  { %1979 = vrcp.f32 %v413_v48 }
 0x48c   :  { %1981 = vrcp.f32 %v416_v44  ;;  %v410_v49 = vpop.xlane.xlu0 %409 }
 0x48d   :  { %1983 = vrcp.f32 %v410_v49 }
 0x48e   :  { %v1978_v52 = vpop.eup %1977  ;;  %v606_v58 = vpop.xlane.xlu1 %605  ;;  %1985 = vrcp.f32 %v609_v47 }
 0x48f   :  { %v427_v57 = vmul.f32 %v1978_v52, %v1964_v27  ;;  %1987 = vrcp.f32 %v606_v58 }
 0x490   :  { %v433_v51 = vpop.permute.xlu0 %432  ;;  %1989 = vrcp.f32 %v612_v46 }
 0x491   :  { %1819 = vmatprep.subr.bf16.mxu1 %v433_v51 }
 0x492   :  { %1820 = vmatpush3.bf16.msra.mxu1 %v433_v51  ;;  %v624_v63 = vpop.permute.xlu1 %623 }
 0x493   :  { %1821 = vmatprep.subr.bf16.mxu1 %v431_v62 }
 0x496   :  { %1822 = vmatpush3.bf16.msra.mxu1 %v431_v62  ;;  %v710_v3 = vpop.permute.xlu1 %709 }
 0x497   :  { %1835 = vmatprep.subr.bf16.mxu1 %v626_v24 }
 0x498   :  { %v1980_v53 = vpop.eup %1979 }
 0x499   :  { %v1982_v54 = vpop.eup %1981  ;;  %v425_v60 = vmul.f32 %v1980_v53, %v1968_v30 }
 0x49a   :  { %v1984_v55 = vpop.eup %1983  ;;  %v426_v56 = vmul.f32 %v1982_v54, %v2353_v23  ;;  %v902_v7 = vpop.permute.xlu1 %901 }
 0x49b   :  { %v424_v59 = vmul.f32 %v1984_v55, %v1972_v13  ;;  %v1986_v8 = vpop.eup %1985  ;;  %v912_v23 = vsel %vm309_vm1, %v902_v7, 0 }
 0x49c   :  { %v429_v0 = vpack.c.bf16 %v427_v57, %v426_v56  ;;  %v1988_v9 = vpop.eup %1987  ;;  %v619_v16 = vmul.f32 %v1986_v8, %v2362_v32 }
 0x49d   :  { %v428_v61 = vpack.c.bf16 %v425_v60, %v424_v59  ;;  %v1990_v11 = vpop.eup %1989  ;;  %v618_v12 = vmul.f32 %v1988_v9, %v2367_v36 }
 0x49e   :  { %v620_v22 = vmul.f32 %v1990_v11, %v2358_v29  ;;  %v900_v30 = vpop.permute.xlu1 %899  ;;  %v720_v29 = vsel %vm309_vm1, %v710_v3, 0 }
 0x49f   :  { %1823 = vmatprep.mubr.msk.bf16.mxu1 %vm383_vm2, %v428_v61 }
 0x4a0   :  { %1824 = vmatmul.mubr.msk.bf16.vlgmr.msra.gmra.mxu1 %vm383_vm2, %v429_v0  ;;  %v622_v27 = vpack.c.bf16 %v620_v22, %v619_v16 }
 0x4a1   :  { %1836 = vmatpush3.bf16.msra.mxu1 %v626_v24 }
 0x4a2   :  { %1837 = vmatprep.subr.bf16.mxu1 %v624_v63 }
 0x4a5   :  { %1838 = vmatpush3.bf16.msra.mxu1 %v624_v63 }
 0x4c1   :  { %v603_v2 = vpop.xlane.xlu0 %602 }
 0x4c2   :  { %1991 = vrcp.f32 %v603_v2 }
 0x4c5   :  { %v712_v4 = vpop.permute.xlu0 %711 }
 0x4c6   :  { %1918 = vmatprep.subr.msk.bf16.mxu1 %vm309_vm1, %v712_v4  ;;  %v723_v28 = vsel %vm309_vm1, %v712_v4, 0 }
 0x4c9   :  { %v904_v5 = vpop.permute.xlu0 %903 }
 0x4ca   :  { %v915_v6 = vsel %vm309_vm1, %v904_v5, 0  ;;  %1920 = vmatprep.subr.msk.bf16.mxu0 %vm309_vm1, %v904_v5 }
 0x4cb   :  { %1860 = vmatpush3.bf16.xpose.msra.mxu0 %v915_v6 }
 0x4cc   :  { %1921 = vmatprep.subr.msk.bf16.mxu0 %vm309_vm1, %v902_v7 }
 0x4cd   :  { %v898_v10 = vpop.permute.xlu0 %897 }
 0x4ce   :  { %1863 = vmatprep.mubr.msk.bf16.mxu0 %vm309_vm1, %v898_v10 }
 0x4cf   :  { %v1992_v14 = vpop.eup %1991 }
 0x4d0   :  { %v617_v18 = vmul.f32 %v1992_v14, %v1976_v1 }
 0x4d2   :  { %v621_v25 = vpack.c.bf16 %v618_v12, %v617_v18 }
 0x4d3   :  { %1862 = vmatpush3.bf16.xpose.msra.mxu0 %v912_v23 }
 0x4d4   :  { %1839 = vmatprep.mubr.msk.bf16.mxu1 %vm383_vm2, %v621_v25 }
 0x4d5   :  { %1840 = vmatmul.mubr.msk.bf16.vlgmr.msra.gmra.mxu1 %vm383_vm2, %v622_v27 }
 0x4d6   :  { %1844 = vmatpush3.bf16.xpose.msra.mxu1 %v723_v28  ;;  %1847 = vmatprep.mubr.msk.bf16.mxu1 %vm309_vm1, %v2376_v21 }
 0x4d7   :  { %1919 = vmatprep.subr.msk.bf16.mxu1 %vm309_vm1, %v710_v3 }
 0x4da   :  { %1864 = vmatmul.mubr.msk.bf16.vlgmr.msra.gmra.mxu0 %vm309_vm1, %v900_v30 }
 0x4de   :  { %1846 = vmatpush3.bf16.xpose.msra.mxu1 %v720_v29 }
 0x4e5   :  { %1848 = vmatmul.mubr.msk.bf16.vlgmr.msra.gmra.mxu1 %vm309_vm1, %v2282_v17 }
 0x560   :  { %v1825_v31 = vpop.f32.mrf.mxu1 }
 0x561   :  { %493 = vst.msk [vmem:[#allocation2 + $0x10] sm:$0xff] %vm309_vm1, %v1825_v31 }
 0x562   :  { %v476_v32 = vpop.f32.mrf.mxu1 }
 0x563   :  { %491 = vst.msk [vmem:[#allocation2] sm:$0xff] %vm309_vm1, %v476_v32 }
 0x564   :  { %v1826_v33 = vpop.f32.mrf.mxu1 }
 0x565   :  { %494 = vst.msk [vmem:[#allocation2 + $0x18] sm:$0xff] %vm309_vm1, %v1826_v33 }
 0x566   :  { %v479_v13 = vpop.f32.mrf.mxu1 }
 0x567   :  { %492 = vst.msk [vmem:[#allocation2 + $0x8] sm:$0xff] %vm309_vm1, %v479_v13 }
 0x595   :  { %v2420_v35 = vpop.f32.mrf.mxu1 }
 0x597   :  { %v2422_v36 = vpop.f32.mrf.mxu1 }
 0x599   :  { %v2424_v38 = vpop.f32.mrf.mxu1 }
 0x59a   :  { %v1865_v37 = vpop.f32.mrf.mxu0 }
 0x59b   :  { %v2426_v40 = vpop.f32.mrf.mxu1  ;;  %v968_v61 = vmul.f32 0.35355338, %v1865_v37 }
 0x59c   :  { %v951_v39 = vpop.f32.mrf.mxu0 }
 0x59d   :  { %v966_v57 = vmul.f32 0.35355338, %v951_v39 }
 0x59e   :  { %v1866_v1 = vpop.f32.mrf.mxu0 }
 0x59f   :  { %v969_v58 = vmul.f32 0.35355338, %v1866_v1  ;;  %v974_v0 = vadd.f32 %v2324_v42, %v966_v57 }
 0x5a0   :  { %v954_v24 = vpop.f32.mrf.mxu0 }
 0x5a1   :  { %v967_v48 = vmul.f32 0.35355338, %v954_v24  ;;  %v977_v63 = vadd.f32 %v2329_v45, %v969_v58  ;;  %v978_v2 = vsel %vm383_vm2, %v974_v0, -inf }
 0x5a3   :  { %v975_v56 = vadd.f32 %v2319_v41, %v967_v48  ;;  %v976_v41 = vadd.f32 %v2339_v50, %v968_v61 }
 0x5a5   :  { %v1849_v15 = vpop.f32.mrf.mxu1  ;;  %v984_v3 = vsel %vm383_vm2, %v976_v41, -inf }
 0x5a6   :  { %v776_v43 = vmul.f32 0.35355338, %v1849_v15 }
 0x5a7   :  { %v759_v62 = vpop.f32.mrf.mxu1 }
 0x5a8   :  { %v774_v44 = vmul.f32 0.35355338, %v759_v62  ;;  %v784_v54 = vadd.f32 %v776_v43, %v2294_v26 }
 0x5a9   :  { %v1850_v46 = vpop.f32.mrf.mxu1 }
 0x5aa   :  { %v782_v47 = vadd.f32 %v774_v44, %v2287_v19  ;;  %v777_v51 = vmul.f32 0.35355338, %v1850_v46  ;;  %v792_v59 = vsel %vm383_vm2, %v784_v54, -inf }
 0x5ab   :  { %v762_v49 = vpop.f32.mrf.mxu1 }
 0x5ac   :  { %v775_v52 = vmul.f32 0.35355338, %v762_v49  ;;  %v786_v53 = vsel %vm383_vm2, %v782_v47, -inf  ;;  %v2438_v19 = vadd.f32 %v777_v51, %v2310_v34  ;;  %v987_v34 = vsel %vm383_vm2, %v977_v63, -inf }
 0x5ad   :  { %787 = vmax.xlane.f32.xlu0 %v786_v53 }
 0x5ae   :  { %v2432_v55 = vadd.f32 %v775_v52, %v2302_v20  ;;  %v795_v26 = vsel %vm383_vm2, %v2438_v19, -inf  ;;  %v981_v20 = vsel %vm383_vm2, %v975_v56, -inf }
 0x5b0   :  { %v789_v60 = vsel %vm383_vm2, %v2432_v55, -inf }
 0x5b1   :  { %793 = vmax.xlane.f32.xlu0 %v792_v59  ;;  %790 = vmax.xlane.f32.xlu1 %v789_v60 }
 0x5b5   :  { %796 = vmax.xlane.f32.xlu0 %v795_v26  ;;  %982 = vmax.xlane.f32.xlu1 %v981_v20 }
 0x5b9   :  { %979 = vmax.xlane.f32.xlu0 %v978_v2  ;;  %988 = vmax.xlane.f32.xlu1 %v987_v34 }
 0x5bd   :  { %985 = vmax.xlane.f32.xlu0 %v984_v3 }
 0x636   :  { %v788_v4 = vpop.xlane.xlu0 %787 }
 0x637   :  { %v798_v25 = vsub.f32 %v782_v47, %v788_v4 }
 0x639   :  { %v802_v28 = vmul.f32 1.442695, %v798_v25 }
 0x63a   :  { %v791_v5 = vpop.xlane.xlu1 %790  ;;  %v794_v6 = vpop.xlane.xlu0 %793 }
 0x63b   :  { %v800_v50 = vsub.f32 %v784_v54, %v794_v6  ;;  %v799_v44 = vsub.f32 %v2432_v55, %v791_v5 }
 0x63d   :  { %v806_v27 = vmul.f32 1.442695, %v800_v50  ;;  %v804_v47 = vmul.f32 1.442695, %v799_v44 }
 0x63e   :  { %v983_v7 = vpop.xlane.xlu1 %982  ;;  %v797_v42 = vpop.xlane.xlu0 %796 }
 0x63f   :  { %v991_v8 = vsub.f32 %v975_v56, %v983_v7  ;;  %v801_v43 = vsub.f32 %v2438_v19, %v797_v42 }
 0x641   :  { %v996_v45 = vmul.f32 1.442695, %v991_v8  ;;  %v808_v46 = vmul.f32 1.442695, %v801_v43 }
 0x642   :  { %v989_v9 = vpop.xlane.xlu1 %988  ;;  %v980_v10 = vpop.xlane.xlu0 %979 }
 0x643   :  { %1993 = vpow2.f32 %v996_v45  ;;  %v993_v11 = vsub.f32 %v977_v63, %v989_v9  ;;  %v990_v14 = vsub.f32 %v974_v0, %v980_v10 }
 0x645   :  { %v1000_v16 = vmul.f32 1.442695, %v993_v11  ;;  %v994_v18 = vmul.f32 1.442695, %v990_v14  ;;  %v1939_v14 = vld [vmem:[%s2723_s4] sm:$0xff]  }
 0x646   :  { %v986_v12 = vpop.xlane.xlu0 %985 }
 0x647   :  { %1995 = vpow2.f32 %v1000_v16  ;;  %v992_v22 = vsub.f32 %v976_v41, %v986_v12  ;;  %v1144_v12 = vsel %vm56_vm0, %v1939_v14, 0 }
 0x648   :  { %1997 = vpow2.f32 %v994_v18 }
 0x649   :  { %v998_v23 = vmul.f32 1.442695, %v992_v22 }
 0x64b   :  { %1999 = vpow2.f32 %v998_v23 }
 0x64c   :  { %2001 = vpow2.f32 %v806_v27 }
 0x64d   :  { %2003 = vpow2.f32 %v802_v28 }
 0x64e   :  { %2005 = vpow2.f32 %v808_v46  ;;  %v2057_v46 = vld [vmem:[%s2719_s0] sm:$0xff] }
 0x64f   :  { %2007 = vpow2.f32 %v804_v47 }
 0x650   :  { %v2450_v30 = vpop.eup %1993 }
 0x651   :  { %v1005_v29 = vsel %vm383_vm2, %v2450_v30, 0.0 }
 0x652   :  { %1006 = vadd.xlane.f32.xlu1 %v1005_v29 }
 0x654   :  { %v2454_v31 = vpop.eup %1995 }
 0x655   :  { %v2456_v32 = vpop.eup %1997  ;;  %v1011_v33 = vsel %vm383_vm2, %v2454_v31, 0.0 }
 0x656   :  { %1012 = vadd.xlane.f32.xlu1 %v1011_v33  ;;  %v1002_v13 = vsel %vm383_vm2, %v2456_v32, 0.0 }
 0x657   :  { %1003 = vadd.xlane.f32.xlu0 %v1002_v13 }
 0x658   :  { %v2462_v37 = vpop.eup %1999 }
 0x659   :  { %v1008_v39 = vsel %vm383_vm2, %v2462_v37, 0.0  ;;  %v2466_v1 = vpop.eup %2001 }
 0x65a   :  { %v816_v15 = vsel %vm383_vm2, %v2466_v1, 0.0  ;;  %v2470_v62 = vpop.eup %2003 }
 0x65b   :  { %1009 = vadd.xlane.f32.xlu0 %v1008_v39  ;;  %v810_v24 = vsel %vm383_vm2, %v2470_v62, 0.0  ;;  %v2006_v48 = vpop.eup %2005 }
 0x65c   :  { %v819_v49 = vsel %vm383_vm2, %v2006_v48, 0.0  ;;  %v2008_v51 = vpop.eup %2007 }
 0x65f   :  { %817 = vadd.xlane.f32.xlu0 %v816_v15 }
 0x663   :  { %811 = vadd.xlane.f32.xlu0 %v810_v24 }
 0x667   :  { %832 = vrot.lane.b32.xlu1 %v2376_v21, %s2090_s15 }
 0x66b   :  { %1026 = vrot.lane.b32.xlu1 %v2282_v17, %s2091_s6 }
 0x679   :  { %834 = vrot.lane.b32.xlu0 %v2282_v17, %s2090_s15  ;;  %v813_v17 = vsel %vm383_vm2, %v2008_v51, 0.0 }
 0x67d   :  { %688 = vrot.lane.b32.xlu0 %v2422_v36, %s2092_s1 }
 0x681   :  { %692 = vrot.lane.b32.xlu0 %v2420_v35, %s2092_s1 }
 0x68f   :  { %820 = vadd.xlane.f32.xlu1 %v819_v49  ;;  %v2058_v49 = vld [vmem:[%s2719_s0 + $0x10] sm:$0xff] }
 0x693   :  { %814 = vadd.xlane.f32.xlu1 %v813_v17 }
 0x6a4   :  { %1024 = vrot.lane.b32.xlu1 %v2376_v21, %s2091_s6 }
 0x6a8   :  { %690 = vrot.lane.b32.xlu1 %v2426_v40, %s2092_s1 }
 0x6ac   :  { %694 = vrot.lane.b32.xlu1 %v2424_v38, %s2092_s1 }
 0x6db   :  { %v1007_v35 = vpop.xlane.xlu1 %1006 }
 0x6dc   :  { %2009 = vrcp.f32 %v1007_v35 }
 0x6df   :  { %v1013_v54 = vpop.xlane.xlu1 %1012 }
 0x6e0   :  { %v1004_v36 = vpop.xlane.xlu0 %1003 }
 0x6e1   :  { %2011 = vrcp.f32 %v1004_v36 }
 0x6e3   :  { %v833_v57 = vpop.permute.xlu1 %832 }
 0x6e4   :  { %v1010_v52 = vpop.xlane.xlu0 %1009 }
 0x6e7   :  { %v1027_v21 = vpop.permute.xlu1 %1026 }
 0x6e8   :  { %v818_v53 = vpop.xlane.xlu0 %817 }
 0x6e9   :  { %v2010_v61 = vpop.eup %2009 }
 0x6ea   :  { %v1019_v42 = vmul.f32 %v2010_v61, %v2450_v30 }
 0x6ec   :  { %v812_v55 = vpop.xlane.xlu0 %811 }
 0x6ee   :  { %v2012_v26 = vpop.eup %2011 }
 0x6ef   :  { %v1018_v5 = vmul.f32 %v2012_v26, %v2456_v32 }
 0x6f0   :  { %v835_v58 = vpop.permute.xlu0 %834 }
 0x6f1   :  { %1851 = vmatprep.subr.bf16.mxu1 %v835_v58  ;;  %v1022_v9 = vpack.c.bf16 %v1019_v42, %v1018_v5  ;;  %v2061_v42 = vld [vmem:[%s2719_s0 + $0x20] sm:$0xff] }
 0x6f2   :  { %1852 = vmatpush3.bf16.msra.mxu1 %v835_v58 }
 0x6f3   :  { %1853 = vmatprep.subr.bf16.mxu1 %v833_v57 }
 0x6f4   :  { %v689_v59 = vpop.permute.xlu0 %688 }
 0x6f5   :  { %701 = vst.msk [vmem:[#allocation2] sm:$0xff] %vm700_vm3, %v689_v59 }
 0x6f6   :  { %1854 = vmatpush3.bf16.msra.mxu1 %v833_v57 }
 0x6f7   :  { %1867 = vmatprep.subr.bf16.mxu1 %v1027_v21 }
 0x6f8   :  { %v693_v40 = vpop.permute.xlu0 %692 }
 0x6f9   :  { %703 = vst.msk [vmem:[#allocation2 + $0x10] sm:$0xff] %vm700_vm3, %v693_v40 }
 0x6fc   :  { %v1105_v22 = vld [vmem:[#allocation2] sm:$0xff] }
 0x700   :  { %v1107_v27 = vld [vmem:[#allocation2 + $0x10] sm:$0xff] }
 0x718   :  { %v821_v38 = vpop.xlane.xlu1 %820 }
 0x719   :  { %2013 = vrcp.f32 %v821_v38 }
 0x71a   :  { %2015 = vrcp.f32 %v812_v55  ;;  %v2060_v55 = vld [vmem:[%s2719_s0 + $0x8] sm:$0xff] }
 0x71b   :  { %2017 = vrcp.f32 %v818_v53 }
 0x71c   :  { %v815_v60 = vpop.xlane.xlu1 %814 }
 0x71d   :  { %2019 = vrcp.f32 %v815_v60 }
 0x71e   :  { %2021 = vrcp.f32 %v1010_v52  ;;  %v2059_v52 = vld [vmem:[%s2719_s0 + $0x18] sm:$0xff] }
 0x71f   :  { %2023 = vrcp.f32 %v1013_v54 }
 0x720   :  { %v1025_v19 = vpop.permute.xlu1 %1024 }
 0x724   :  { %v691_v56 = vpop.permute.xlu1 %690 }
 0x725   :  { %702 = vst.msk [vmem:[#allocation2 + $0x8] sm:$0xff] %vm700_vm3, %v691_v56 }
 0x726   :  { %v2014_v20 = vpop.eup %2013 }
 0x727   :  { %v2016_v0 = vpop.eup %2015  ;;  %v829_v41 = vmul.f32 %v2014_v20, %v2006_v48 }
 0x728   :  { %v695_v63 = vpop.permute.xlu1 %694  ;;  %v2018_v2 = vpop.eup %2017  ;;  %v826_v3 = vmul.f32 %v2016_v0, %v2470_v62  ;;  %v1717_v62 = vld [vmem:[%s2724_s5] ss:$0 sm:$0xff] }
 0x729   :  { %704 = vst.msk [vmem:[#allocation2 + $0x18] sm:$0xff] %vm700_vm3, %v695_v63  ;;  %v828_v6 = vmul.f32 %v2018_v2, %v2466_v1 }
 0x72a   :  { %v2020_v34 = vpop.eup %2019 }
 0x72b   :  { %v827_v4 = vmul.f32 %v2020_v34, %v2008_v51  ;;  %v831_v8 = vpack.c.bf16 %v829_v41, %v828_v6  ;;  %v2022_v45 = vpop.eup %2021 }
 0x72c   :  { %v2024_v10 = vpop.eup %2023  ;;  %v1020_v11 = vmul.f32 %v2022_v45, %v2462_v37  ;;  %v1106_v18 = vld [vmem:[#allocation2 + $0x8] sm:$0xff] }
 0x72d   :  { %v830_v7 = vpack.c.bf16 %v827_v4, %v826_v3  ;;  %v1021_v16 = vmul.f32 %v2024_v10, %v2454_v31  ;;  %v1113_v23 = vpack.c.bf16 %v1106_v18, %v1105_v22 }
 0x72f   :  { %1855 = vmatprep.mubr.msk.bf16.mxu1 %vm383_vm2, %v830_v7  ;;  %v1023_v50 = vpack.c.bf16 %v1021_v16, %v1020_v11  ;;  %v2062_v16 = vld [vmem:[%s2719_s0 + $0x30] sm:$0xff] }
 0x730   :  { %1856 = vmatmul.mubr.msk.bf16.vlgmr.msra.gmra.mxu1 %vm383_vm2, %v831_v8  ;;  %v1108_v25 = vld [vmem:[#allocation2 + $0x18] sm:$0xff] }
 0x731   :  { %1868 = vmatpush3.bf16.msra.mxu1 %v1027_v21  ;;  %1871 = vmatprep.mubr.msk.bf16.mxu1 %vm383_vm2, %v1022_v9  ;;  %v1114_v28 = vpack.c.bf16 %v1108_v25, %v1107_v27 }
 0x732   :  { %1869 = vmatprep.subr.bf16.mxu1 %v1025_v19 }
 0x735   :  { %1870 = vmatpush3.bf16.msra.mxu1 %v1025_v19 }
 0x736   :  { %1922 = vmatprep.subr.msk.bf16.mxu1 %vm56_vm0, %v1939_v14 }
 0x738   :  { %1872 = vmatmul.mubr.msk.bf16.vlgmr.msra.gmra.mxu1 %vm383_vm2, %v1023_v50 }
 0x739   :  { %1876 = vmatpush3.bf16.xpose.msra.mxu1 %v1144_v12  ;;  %1877 = vmatprep.mubr.msk.bf16.mxu1 %vm56_vm0, %v1113_v23  ;;  %v2063_v23 = vld [vmem:[%s2719_s0 + $0x28] sm:$0xff] }
 0x740   :  { %1878 = vmatmul.mubr.msk.bf16.vlgmr.msra.gmra.mxu1 %vm56_vm0, %v1114_v28 }
 0x7f0   :  { %v1857_v30 = vpop.f32.mrf.mxu1 }
 0x7f1   :  { %895 = vst.msk [vmem:[#allocation2 + $0x30] sm:$0xff] %vm309_vm1, %v1857_v30 }
 0x7f2   :  { %v878_v29 = vpop.f32.mrf.mxu1 }
 0x7f3   :  { %893 = vst.msk [vmem:[#allocation2 + $0x20] sm:$0xff] %vm309_vm1, %v878_v29 }
 0x7f4   :  { %v1858_v31 = vpop.f32.mrf.mxu1 }
 0x7f5   :  { %896 = vst.msk [vmem:[#allocation2 + $0x38] sm:$0xff] %vm309_vm1, %v1858_v31  ;;  %v2064_v31 = vld [vmem:[%s2719_s0 + $0x38] sm:$0xff] }
 0x7f6   :  { %v881_v32 = vpop.f32.mrf.mxu1 }
 0x7f7   :  { %894 = vst.msk [vmem:[#allocation2 + $0x28] sm:$0xff] %vm309_vm1, %v881_v32 }
 0x7f8   :  { %v1873_v33 = vpop.f32.mrf.mxu1 }
 0x7fa   :  { %v1070_v13 = vpop.f32.mrf.mxu1 }
 0x7fb   :  { %1089 = vrot.lane.b32.xlu0 %v1070_v13, %s2092_s1 }
 0x7fc   :  { %v1874_v37 = vpop.f32.mrf.mxu1 }
 0x7fe   :  { %v1073_v39 = vpop.f32.mrf.mxu1 }
 0x7ff   :  { %1093 = vrot.lane.b32.xlu0 %v1873_v33, %s2092_s1  ;;  %1091 = vrot.lane.b32.xlu1 %v1073_v39, %s2092_s1 }
 0x800   :  { %v1879_v1 = vpop.f32.mrf.mxu1 }
 0x801   :  { %v1189_v44 = vadd.f32 %v1879_v1, %v1717_v62 }
 0x802   :  { %v1180_v15 = vpop.f32.mrf.mxu1 }
 0x803   :  { %1095 = vrot.lane.b32.xlu1 %v1874_v37, %s2092_s1  ;;  %v1181_v24 = vadd.f32 %v1717_v62, %v1180_v15  ;;  %v2534_v51 = vadd.f32 %v2058_v49, %v1189_v44 }
 0x804   :  { %v1880_v43 = vpop.f32.mrf.mxu1 }
 0x805   :  { %v2529_v47 = vadd.f32 %v2057_v46, %v1181_v24  ;;  %v1192_v17 = vadd.f32 %v1880_v43, %v1717_v62  ;;  %v1227_v54 = vsel %vm56_vm0, %v2534_v51, 0.0 }
 0x806   :  { %v1183_v48 = vpop.f32.mrf.mxu1 }
 0x807   :  { %v1221_v36 = vsel %vm56_vm0, %v2529_v47, 0.0  ;;  %v1184_v35 = vadd.f32 %v1717_v62, %v1183_v48  ;;  %v2541_v53 = vadd.f32 %v2059_v52, %v1192_v17  ;;  %v1940_v48 = vld [vmem:[%s2728_s9 + $0x18] sm:$0xff]   ;;  %v1941_v17 = vld [vmem:[%s2728_s9 + $0x10] sm:$0xff]  }
 0x808   :  { %1923 = vmatprep.subr.msk.bf16.mxu0 %vm56_vm0, %v1940_v48  ;;  %v1414_v49 = vsel %vm56_vm0, %v1940_v48, 0 }
 0x809   :  { %v2548_v57 = vadd.f32 %v2060_v55, %v1184_v35  ;;  %v1230_v58 = vsel %vm56_vm0, %v2541_v53, 0.0  ;;  %1886 = vmatpush3.bf16.xpose.msra.mxu0 %v1414_v49  ;;  %v1942_v35 = vld [vmem:[%s2728_s9 + $0x8] sm:$0xff]  }
 0x80a   :  { %1924 = vmatprep.subr.msk.bf16.mxu0 %vm56_vm0, %v1941_v17  ;;  %v1408_v52 = vsel %vm56_vm0, %v1942_v35, 0 }
 0x80b   :  { %v1224_v59 = vsel %vm56_vm0, %v2548_v57, 0.0 }
 0x81e   :  { %1222 = vadd.xlane.f32.xlu0 %v1221_v36  ;;  %v1411_v36 = vsel %vm56_vm0, %v1941_v17, 0 }
 0x81f   :  { %1888 = vmatpush3.bf16.xpose.msra.mxu0 %v1411_v36 }
 0x820   :  { %1925 = vmatprep.subr.msk.bf16.mxu0 %vm56_vm0, %v1942_v35 }
 0x822   :  { %1228 = vadd.xlane.f32.xlu0 %v1227_v54  ;;  %v1943_v54 = vld [vmem:[%s2728_s9] sm:$0xff]  }
 0x823   :  { %v1405_v55 = vsel %vm56_vm0, %v1943_v54, 0 }
 0x826   :  { %1231 = vadd.xlane.f32.xlu0 %v1230_v58 }
 0x827   :  { %1225 = vadd.xlane.f32.xlu1 %v1224_v59  ;;  %1890 = vmatpush3.bf16.xpose.msra.mxu0 %v1408_v52 }
 0x828   :  { %1926 = vmatprep.subr.msk.bf16.mxu0 %vm56_vm0, %v1943_v54 }
 0x82f   :  { %1892 = vmatpush3.bf16.xpose.msra.mxu0 %v1405_v55 }
 0x86d   :  { %v1090_v21 = vpop.permute.xlu0 %1089 }
 0x86e   :  { %1101 = vst.msk [vmem:[#allocation2 + $0x20] sm:$0xff] %vm700_vm3, %v1090_v21 }
 0x871   :  { %v1092_v40 = vpop.permute.xlu1 %1091  ;;  %v1094_v38 = vpop.permute.xlu0 %1093 }
 0x872   :  { %1102 = vst.msk [vmem:[#allocation2 + $0x28] sm:$0xff] %vm700_vm3, %v1092_v40  ;;  %1103 = vst.msk [vmem:[#allocation2 + $0x30] sm:$0xff] %vm700_vm3, %v1094_v38 }
 0x875   :  { %v1096_v60 = vpop.permute.xlu1 %1095  ;;  %v1109_v19 = vld [vmem:[#allocation2 + $0x20] sm:$0xff] }
 0x876   :  { %1104 = vst.msk [vmem:[#allocation2 + $0x38] sm:$0xff] %vm700_vm3, %v1096_v60 }
 0x879   :  { %v1110_v56 = vld [vmem:[#allocation2 + $0x28] sm:$0xff]  ;;  %v1111_v26 = vld [vmem:[#allocation2 + $0x30] sm:$0xff] }
 0x87a   :  { %v1115_v61 = vpack.c.bf16 %v1110_v56, %v1109_v19 }
 0x87c   :  { %1881 = vmatprep.mubr.msk.bf16.mxu1 %vm56_vm0, %v1115_v61 }
 0x87d   :  { %v1112_v20 = vld [vmem:[#allocation2 + $0x38] sm:$0xff] }
 0x87e   :  { %v1116_v0 = vpack.c.bf16 %v1112_v20, %v1111_v26 }
 0x880   :  { %1882 = vmatmul.mubr.msk.bf16.gmra.mxu1 %vm56_vm0, %v1116_v0 }
 0x8a7   :  { %v1223_v63 = vpop.xlane.xlu0 %1222 }
 0x8a8   :  { %v1245_v41 = vmul.f32 0.0625, %v1223_v63 }
 0x8aa   :  { %v2566_v45 = vsub.f32 %v2529_v47, %v1245_v41 }
 0x8ab   :  { %v1229_v34 = vpop.xlane.xlu0 %1228 }
 0x8ac   :  { %v1247_v9 = vmul.f32 0.0625, %v1229_v34  ;;  %v1261_v30 = vmul.f32 %v2566_v45, %v2566_v45 }
 0x8ae   :  { %v2581_v27 = vsub.f32 %v2534_v51, %v1247_v9  ;;  %v1269_v37 = vsel %vm56_vm0, %v1261_v30, 0.0 }
 0x8af   :  { %v1232_v14 = vpop.xlane.xlu0 %1231 }
 0x8b0   :  { %v1226_v4 = vpop.xlane.xlu1 %1225  ;;  %v1248_v28 = vmul.f32 0.0625, %v1232_v14 }
 0x8b1   :  { %v1246_v10 = vmul.f32 0.0625, %v1226_v4 }
 0x8b2   :  { %v2599_v39 = vsub.f32 %v2541_v53, %v1248_v28 }
 0x8b3   :  { %v2586_v29 = vsub.f32 %v2548_v57, %v1246_v10 }
 0x8b4   :  { %v1264_v44 = vmul.f32 %v2599_v39, %v2599_v39 }
 0x8b5   :  { %v1262_v15 = vmul.f32 %v2586_v29, %v2586_v29 }
 0x8b6   :  { %v1278_v46 = vsel %vm56_vm0, %v1264_v44, 0.0 }
 0x8b7   :  { %v1272_v24 = vsel %vm56_vm0, %v1262_v15, 0.0 }
 0x940   :  { %v1883_v2 = vpop.f32.mrf.mxu1 }
 0x941   :  { %v1205_v5 = vadd.f32 %v1883_v2, %v1717_v62 }
 0x942   :  { %v1196_v3 = vpop.f32.mrf.mxu1 }
 0x943   :  { %v1197_v6 = vadd.f32 %v1717_v62, %v1196_v3  ;;  %v2571_v18 = vadd.f32 %v2062_v16, %v1205_v5 }
 0x944   :  { %v1884_v7 = vpop.f32.mrf.mxu1 }
 0x945   :  { %v2563_v8 = vadd.f32 %v2061_v42, %v1197_v6  ;;  %v1208_v50 = vadd.f32 %v1884_v7, %v1717_v62  ;;  %v1239_v13 = vsel %vm56_vm0, %v2571_v18, 0.0 }
 0x946   :  { %v1199_v11 = vpop.f32.mrf.mxu1 }
 0x947   :  { %v1200_v12 = vadd.f32 %v1717_v62, %v1199_v11  ;;  %v1233_v22 = vsel %vm56_vm0, %v2563_v8, 0.0  ;;  %v2591_v32 = vadd.f32 %v2064_v31, %v1208_v50  ;;  %v1263_v62 = vmul.f32 %v2581_v27, %v2581_v27 }
 0x948   :  { %1234 = vadd.xlane.f32.xlu0 %v1233_v22 }
 0x949   :  { %v2578_v25 = vadd.f32 %v2063_v23, %v1200_v12  ;;  %v1242_v1 = vsel %vm56_vm0, %v2591_v32, 0.0  ;;  %v1275_v43 = vsel %vm56_vm0, %v1263_v62, 0.0 }
 0x94b   :  { %v1236_v33 = vsel %vm56_vm0, %v2578_v25, 0.0 }
 0x94c   :  { %1237 = vadd.xlane.f32.xlu1 %v1236_v33  ;;  %1240 = vadd.xlane.f32.xlu0 %v1239_v13  ;;  %v1723_v33 = vld [vmem:[%s2726_s7] ss:$0 sm:$0xff] }
 0x950   :  { %1243 = vadd.xlane.f32.xlu1 %v1242_v1  ;;  %1270 = vadd.xlane.f32.xlu0 %v1269_v37 }
 0x954   :  { %1273 = vadd.xlane.f32.xlu1 %v1272_v24  ;;  %1276 = vadd.xlane.f32.xlu0 %v1275_v43  ;;  %v1724_v24 = vld [vmem:[%s2727_s8] ss:$0 sm:$0xff] }
 0x958   :  { %1279 = vadd.xlane.f32.xlu1 %v1278_v46 }
 0x9d1   :  { %v1235_v58 = vpop.xlane.xlu0 %1234 }
 0x9d2   :  { %v1249_v59 = vmul.f32 0.0625, %v1235_v58 }
 0x9d4   :  { %v2633_v21 = vsub.f32 %v2563_v8, %v1249_v59 }
 0x9d5   :  { %v1238_v40 = vpop.xlane.xlu1 %1237  ;;  %v1241_v38 = vpop.xlane.xlu0 %1240 }
 0x9d6   :  { %v1250_v60 = vmul.f32 0.0625, %v1238_v40  ;;  %v1251_v19 = vmul.f32 0.0625, %v1241_v38  ;;  %v1265_v56 = vmul.f32 %v2633_v21, %v2633_v21 }
 0x9d8   :  { %v2638_v61 = vsub.f32 %v2578_v25, %v1250_v60  ;;  %v2641_v26 = vsub.f32 %v2571_v18, %v1251_v19  ;;  %v1281_v20 = vsel %vm56_vm0, %v1265_v56, 0.0 }
 0x9d9   :  { %v1244_v0 = vpop.xlane.xlu1 %1243  ;;  %1282 = vadd.xlane.f32.xlu0 %v1281_v20  ;;  %v1271_v63 = vpop.xlane.xlu0 %1270 }
 0x9da   :  { %v1252_v2 = vmul.f32 0.0625, %v1244_v0  ;;  %v1293_v34 = vmul.f32 0.0625, %v1271_v63  ;;  %v1266_v41 = vmul.f32 %v2638_v61, %v2638_v61  ;;  %v1267_v3 = vmul.f32 %v2641_v26, %v2641_v26 }
 0x9dc   :  { %v2649_v4 = vsub.f32 %v2591_v32, %v1252_v2  ;;  %v1301_v5 = vadd.f32 1e-05, %v1293_v34  ;;  %v1284_v6 = vsel %vm56_vm0, %v1266_v41, 0.0  ;;  %v1287_v7 = vsel %vm56_vm0, %v1267_v3, 0.0 }
 0x9dd   :  { %v1274_v42 = vpop.xlane.xlu1 %1273  ;;  %1285 = vadd.xlane.f32.xlu1 %v1284_v6  ;;  %1288 = vadd.xlane.f32.xlu0 %v1287_v7  ;;  %v1277_v9 = vpop.xlane.xlu0 %1276 }
 0x9de   :  { %2025 = vrsqrt.f32 %v1301_v5  ;;  %v1294_v10 = vmul.f32 0.0625, %v1274_v42  ;;  %v1295_v11 = vmul.f32 0.0625, %v1277_v9  ;;  %v1268_v14 = vmul.f32 %v2649_v4, %v2649_v4 }
 0x9e0   :  { %v1302_v16 = vadd.f32 1e-05, %v1294_v10  ;;  %v1303_v50 = vadd.f32 1e-05, %v1295_v11  ;;  %v1290_v12 = vsel %vm56_vm0, %v1268_v14, 0.0 }
 0x9e1   :  { %1291 = vadd.xlane.f32.xlu1 %v1290_v12  ;;  %v1280_v22 = vpop.xlane.xlu1 %1279 }
 0x9e2   :  { %2027 = vrsqrt.f32 %v1302_v16  ;;  %v1296_v23 = vmul.f32 0.0625, %v1280_v22 }
 0x9e3   :  { %2029 = vrsqrt.f32 %v1303_v50 }
 0x9e4   :  { %v1304_v28 = vadd.f32 1e-05, %v1296_v23 }
 0x9e6   :  { %2031 = vrsqrt.f32 %v1304_v28 }
 0x9eb   :  { %v2026_v30 = vpop.eup %2025 }
 0x9ec   :  { %v1317_v31 = vmul.f32 %v2026_v30, %v2566_v45 }
 0x9ee   :  { %v1331_v15 = vmul.f32 %v1723_v33, %v1317_v31 }
 0x9ef   :  { %v2028_v13 = vpop.eup %2027 }
 0x9f0   :  { %v2030_v37 = vpop.eup %2029  ;;  %v1318_v1 = vmul.f32 %v2028_v13, %v2586_v29  ;;  %v1345_v45 = vadd.f32 %v1724_v24, %v1331_v15 }
 0x9f1   :  { %v1319_v62 = vmul.f32 %v2030_v37, %v2581_v27  ;;  %v1944_v27 = vld [vmem:[%s2730_s11] sm:$0xff]  }
 0x9f2   :  { %v1332_v43 = vmul.f32 %v1723_v33, %v1318_v1  ;;  %1927 = vmatprep.subr.msk.bf16.mxu1 %vm1571_vm4, %v1944_v27 }
 0x9f3   :  { %v2032_v44 = vpop.eup %2031  ;;  %v1333_v49 = vmul.f32 %v1723_v33, %v1319_v62 }
 0x9f4   :  { %v1320_v46 = vmul.f32 %v2032_v44, %v2599_v39  ;;  %v1346_v48 = vadd.f32 %v1724_v24, %v1332_v43  ;;  %v1585_v39 = vsel %vm1571_vm4, %v1944_v27, 0 }
 0x9f5   :  { %v1347_v35 = vadd.f32 %v1724_v24, %v1333_v49  ;;  %1902 = vmatpush3.bf16.xpose.msra.mxu1 %v1585_v39 }
 0x9f6   :  { %v1353_v17 = vpack.c.bf16 %v1346_v48, %v1345_v45  ;;  %v1334_v36 = vmul.f32 %v1723_v33, %v1320_v46 }
 0x9f8   :  { %1893 = vmatprep.mubr.msk.bf16.mxu0 %vm56_vm0, %v1353_v17  ;;  %v1348_v29 = vadd.f32 %v1724_v24, %v1334_v36 }
 0x9fa   :  { %v1354_v52 = vpack.c.bf16 %v1348_v29, %v1347_v35 }
 0x9fc   :  { %1894 = vmatmul.mubr.msk.bf16.vlgmr.msra.gmra.mxu0 %vm56_vm0, %v1354_v52 }
 0xa62   :  { %v1283_v54 = vpop.xlane.xlu0 %1282 }
 0xa63   :  { %v1297_v55 = vmul.f32 0.0625, %v1283_v54 }
 0xa65   :  { %v1305_v58 = vadd.f32 1e-05, %v1297_v55 }
 0xa66   :  { %v1286_v59 = vpop.xlane.xlu1 %1285  ;;  %v1289_v40 = vpop.xlane.xlu0 %1288 }
 0xa67   :  { %2033 = vrsqrt.f32 %v1305_v58  ;;  %v1298_v38 = vmul.f32 0.0625, %v1286_v59  ;;  %v1299_v60 = vmul.f32 0.0625, %v1289_v40 }
 0xa69   :  { %v1306_v19 = vadd.f32 1e-05, %v1298_v38  ;;  %v1307_v56 = vadd.f32 1e-05, %v1299_v60 }
 0xa6a   :  { %v1292_v20 = vpop.xlane.xlu1 %1291 }
 0xa6b   :  { %2035 = vrsqrt.f32 %v1306_v19  ;;  %v1300_v0 = vmul.f32 0.0625, %v1292_v20 }
 0xa6c   :  { %2037 = vrsqrt.f32 %v1307_v56 }
 0xa6d   :  { %v1308_v63 = vadd.f32 1e-05, %v1300_v0 }
 0xa6f   :  { %2039 = vrsqrt.f32 %v1308_v63 }
 0xa74   :  { %v2034_v2 = vpop.eup %2033 }
 0xa75   :  { %v1321_v34 = vmul.f32 %v2034_v2, %v2633_v21 }
 0xa77   :  { %v1335_v6 = vmul.f32 %v1723_v33, %v1321_v34 }
 0xa78   :  { %v2036_v41 = vpop.eup %2035 }
 0xa79   :  { %v2038_v3 = vpop.eup %2037  ;;  %v1322_v5 = vmul.f32 %v2036_v41, %v2638_v61  ;;  %v1349_v10 = vadd.f32 %v1724_v24, %v1335_v6  ;;  %v2682_v61 = vld [vmem:[%s2729_s10] ss:$0 sm:$0xff] }
 0xa7a   :  { %v1323_v7 = vmul.f32 %v2038_v3, %v2641_v26 }
 0xa7b   :  { %v1336_v42 = vmul.f32 %v1723_v33, %v1322_v5 }
 0xa7c   :  { %v2040_v9 = vpop.eup %2039  ;;  %v1337_v16 = vmul.f32 %v1723_v33, %v1323_v7 }
 0xa7d   :  { %v1350_v11 = vadd.f32 %v1724_v24, %v1336_v42  ;;  %v1324_v14 = vmul.f32 %v2040_v9, %v2649_v4 }
 0xa7e   :  { %v1351_v22 = vadd.f32 %v1724_v24, %v1337_v16 }
 0xa7f   :  { %v1355_v50 = vpack.c.bf16 %v1350_v11, %v1349_v10  ;;  %v1338_v12 = vmul.f32 %v1723_v33, %v1324_v14 }
 0xa81   :  { %1897 = vmatprep.mubr.msk.bf16.mxu0 %vm56_vm0, %v1355_v50  ;;  %v1352_v21 = vadd.f32 %v1724_v24, %v1338_v12 }
 0xa83   :  { %v1356_v23 = vpack.c.bf16 %v1352_v21, %v1351_v22 }
 0xa85   :  { %1898 = vmatmul.mubr.msk.bf16.gmra.mxu0 %vm56_vm0, %v1356_v23 }
 0xabc   :  { %v1895_v26 = vpop.f32.mrf.mxu0 }
 0xabd   :  { %v1459_v28 = vadd.f32 %v1895_v26, %v2682_v61 }
 0xabe   :  { %v1450_v30 = vpop.f32.mrf.mxu0 }
 0xabf   :  { %v1491_v4 = vmul.f32 0.044715, %v1459_v28  ;;  %v1451_v31 = vadd.f32 %v2682_v61, %v1450_v30  ;;  %v1483_v41 = vmul.f32 0.5, %v1459_v28 }
 0xac0   :  { %v1896_v33 = vpop.f32.mrf.mxu0 }
 0xac1   :  { %v1499_v13 = vmul.f32 %v1491_v4, %v1459_v28  ;;  %v1489_v37 = vmul.f32 0.044715, %v1451_v31  ;;  %v1462_v1 = vadd.f32 %v1896_v33, %v2682_v61  ;;  %v1481_v63 = vmul.f32 0.5, %v1451_v31 }
 0xac2   :  { %v1453_v15 = vpop.f32.mrf.mxu0 }
 0xac3   :  { %v1507_v62 = vmul.f32 %v1499_v13, %v1459_v28  ;;  %v1497_v24 = vmul.f32 %v1489_v37, %v1451_v31  ;;  %v1492_v43 = vmul.f32 0.044715, %v1462_v1  ;;  %v1454_v44 = vadd.f32 %v2682_v61, %v1453_v15 }
 0xac4   :  { %v1484_v0 = vmul.f32 0.5, %v1462_v1 }
 0xac5   :  { %v1515_v46 = vadd.f32 %v1507_v62, %v1459_v28  ;;  %v1505_v45 = vmul.f32 %v1497_v24, %v1451_v31  ;;  %v1500_v48 = vmul.f32 %v1492_v43, %v1462_v1  ;;  %v1490_v49 = vmul.f32 0.044715, %v1454_v44 }
 0xac6   :  { %v1482_v2 = vmul.f32 0.5, %v1454_v44 }
 0xac7   :  { %v1523_v17 = vmul.f32 0.7978846, %v1515_v46  ;;  %v1513_v36 = vadd.f32 %v1505_v45, %v1451_v31  ;;  %v1508_v35 = vmul.f32 %v1500_v48, %v1462_v1  ;;  %v1498_v29 = vmul.f32 %v1490_v49, %v1454_v44 }
 0xac9   :  { %v1521_v52 = vmul.f32 0.7978846, %v1513_v36  ;;  %v1516_v27 = vadd.f32 %v1508_v35, %v1462_v1  ;;  %v1506_v39 = vmul.f32 %v1498_v29, %v1454_v44  ;;  %2041 = vtanh.f32 %v1523_v17 }
 0xacb   :  { %v1524_v54 = vmul.f32 0.7978846, %v1516_v27  ;;  %2043 = vtanh.f32 %v1521_v52  ;;  %v1514_v55 = vadd.f32 %v1506_v39, %v1454_v44 }
 0xacd   :  { %2045 = vtanh.f32 %v1524_v54  ;;  %v1522_v58 = vmul.f32 0.7978846, %v1514_v55 }
 0xacf   :  { %2047 = vtanh.f32 %v1522_v58 }
 0xad6   :  { %v2042_v59 = vpop.eup %2041 }
 0xad7   :  { %v1539_v20 = vadd.f32 1.0, %v2042_v59 }
 0xad8   :  { %v2044_v40 = vpop.eup %2043 }
 0xad9   :  { %v1537_v19 = vadd.f32 1.0, %v2044_v40  ;;  %v1547_v7 = vmul.f32 %v1539_v20, %v1483_v41 }
 0xada   :  { %v2046_v38 = vpop.eup %2045 }
 0xadb   :  { %v1540_v60 = vadd.f32 1.0, %v2046_v38  ;;  %v1545_v5 = vmul.f32 %v1537_v19, %v1481_v63  ;;  %v1734_v63 = vld [vmem:[%s2731_s12] ss:$0 sm:$0xff]  ;;  %s2093_s12 = smov [#allocation3]  }
 0xadc   :  { %v2048_v56 = vpop.eup %2047  ;;  %s1673_s23 = sshll.u32 %s2093_s12, 4  ;;  %s1674_s23 = int_to_ptr.vmem [resolvable:$true] %s1673_s23 }
 0xadd   :  { %v1538_v34 = vadd.f32 1.0, %v2048_v56  ;;  %v1548_v3 = vmul.f32 %v1540_v60, %v1484_v0  ;;  %s2065_s24 = scalar_lea.vmem %s1674_s23, 1024  ;;  %p2070_p1 = scmp.lt.s32.totalorder %s1674_s23, %s1674_s23 }
 0xade   :  { %p2066_p0 = scmp.ne.s32.totalorder %s1674_s23, %s2065_s24  ;;  %p2071_p2 = scmp.lt.s32.totalorder %s2065_s24, %s2065_s24 }
 0xadf   :  { %v1546_v6 = vmul.f32 %v1538_v34, %v1482_v2  ;;  %v1554_v9 = vpack.c.bf16 %v1548_v3, %v1547_v7 }
 0xae0   :  { %p2072_p3 = por %p2071_p2, %p2070_p1 }
 0xae1   :  { %v1553_v42 = vpack.c.bf16 %v1546_v6, %v1545_v5 }
 0xae2   :  { %p2073_p4 = pnand %p2072_p3, %p2066_p0 }
 0xae3   :  { %1903 = vmatprep.mubr.msk.bf16.mxu1 %vm1571_vm4, %v1553_v42 }
 0xae4   :  { %1904 = vmatmul.mubr.msk.bf16.vlgmr.msra.gmra.mxu1 %vm1571_vm4, %v1554_v9 }
 0xb45   :  { %v1899_v10 = vpop.f32.mrf.mxu0 }
 0xb46   :  { %v1475_v11 = vadd.f32 %v1899_v10, %v2682_v61 }
 0xb47   :  { %v1466_v14 = vpop.f32.mrf.mxu0 }
 0xb48   :  { %v1495_v16 = vmul.f32 0.044715, %v1475_v11  ;;  %v1467_v50 = vadd.f32 %v2682_v61, %v1466_v14  ;;  %v1487_v40 = vmul.f32 0.5, %v1475_v11 }
 0xb49   :  { %v1900_v12 = vpop.f32.mrf.mxu0 }
 0xb4a   :  { %v1503_v22 = vmul.f32 %v1495_v16, %v1475_v11  ;;  %v1493_v21 = vmul.f32 0.044715, %v1467_v50  ;;  %v1478_v23 = vadd.f32 %v1900_v12, %v2682_v61  ;;  %v1485_v55 = vmul.f32 0.5, %v1467_v50 }
 0xb4b   :  { %v1469_v26 = vpop.f32.mrf.mxu0 }
 0xb4c   :  { %v1511_v28 = vmul.f32 %v1503_v22, %v1475_v11  ;;  %v1501_v30 = vmul.f32 %v1493_v21, %v1467_v50  ;;  %v1496_v4 = vmul.f32 0.044715, %v1478_v23  ;;  %v1470_v31 = vadd.f32 %v2682_v61, %v1469_v26 }
 0xb4d   :  { %v1488_v39 = vmul.f32 0.5, %v1478_v23 }
 0xb4e   :  { %v1519_v33 = vadd.f32 %v1511_v28, %v1475_v11  ;;  %v1509_v13 = vmul.f32 %v1501_v30, %v1467_v50  ;;  %v1504_v37 = vmul.f32 %v1496_v4, %v1478_v23  ;;  %v1494_v1 = vmul.f32 0.044715, %v1470_v31 }
 0xb4f   :  { %v1486_v58 = vmul.f32 0.5, %v1470_v31 }
 0xb50   :  { %v1517_v15 = vadd.f32 %v1509_v13, %v1467_v50  ;;  %v1512_v62 = vmul.f32 %v1504_v37, %v1478_v23  ;;  %v1502_v24 = vmul.f32 %v1494_v1, %v1470_v31  ;;  %v1527_v43 = vmul.f32 0.7978846, %v1519_v33 }
 0xb52   :  { %v1525_v44 = vmul.f32 0.7978846, %v1517_v15  ;;  %v1520_v46 = vadd.f32 %v1512_v62, %v1478_v23  ;;  %v1510_v45 = vmul.f32 %v1502_v24, %v1470_v31 }
 0xb54   :  { %2049 = vtanh.f32 %v1525_v44  ;;  %v1528_v48 = vmul.f32 0.7978846, %v1520_v46  ;;  %v1518_v49 = vadd.f32 %v1510_v45, %v1470_v31 }
 0xb55   :  { %2051 = vtanh.f32 %v1527_v43 }
 0xb56   :  { %2053 = vtanh.f32 %v1528_v48  ;;  %v1526_v17 = vmul.f32 0.7978846, %v1518_v49 }
 0xb58   :  { %2055 = vtanh.f32 %v1526_v17 }
 0xb61   :  { %v2050_v36 = vpop.eup %2049 }
 0xb62   :  { %v2052_v61 = vpop.eup %2051  ;;  %v1541_v29 = vadd.f32 1.0, %v2050_v36 }
 0xb63   :  { %v2054_v35 = vpop.eup %2053  ;;  %v1543_v54 = vadd.f32 1.0, %v2052_v61 }
 0xb64   :  { %v1544_v52 = vadd.f32 1.0, %v2054_v35  ;;  %v1549_v60 = vmul.f32 %v1541_v29, %v1485_v55 }
 0xb65   :  { %v2056_v27 = vpop.eup %2055  ;;  %v1551_v56 = vmul.f32 %v1543_v54, %v1487_v40 }
 0xb66   :  { %v1542_v59 = vadd.f32 1.0, %v2056_v27  ;;  %v1552_v38 = vmul.f32 %v1544_v52, %v1488_v39 }
 0xb68   :  { %v1550_v19 = vmul.f32 %v1542_v59, %v1486_v58  ;;  %v1556_v0 = vpack.c.bf16 %v1552_v38, %v1551_v56 }
 0xb6a   :  { %v1555_v20 = vpack.c.bf16 %v1550_v19, %v1549_v60 }
 0xb6c   :  { %1907 = vmatprep.mubr.msk.bf16.mxu1 %vm1571_vm4, %v1555_v20 }
 0xb6d   :  { %1908 = vmatmul.mubr.msk.bf16.gmra.mxu1 %vm1571_vm4, %v1556_v0 }
 0xba4   :  { %v1905_v2 = vpop.f32.mrf.mxu1 }
 0xba5   :  { %v1630_v34 = vadd.f32 %v1905_v2, %v1734_v63 }
 0xba6   :  { %v1621_v41 = vpop.f32.mrf.mxu1 }
 0xba7   :  { %v1654_v3 = vadd.f32 %v1630_v34, %v2534_v51  ;;  %v1622_v5 = vadd.f32 %v1734_v63, %v1621_v41 }
 0xba8   :  { %v1906_v6 = vpop.f32.mrf.mxu1 }
 0xba9   :  { %1662 = vst.msk [vmem:[#allocation3 + $0x10] sm:$0xff] %vm56_vm0, %v1654_v3  ;;  %v1652_v7 = vadd.f32 %v1622_v5, %v2529_v47  ;;  %v1633_v42 = vadd.f32 %v1906_v6, %v1734_v63 }
 0xbaa   :  { %v1624_v9 = vpop.f32.mrf.mxu1 }
 0xbab   :  { %1660 = vst.msk [vmem:[#allocation3] sm:$0xff] %vm56_vm0, %v1652_v7  ;;  %v1655_v10 = vadd.f32 %v1633_v42, %v2541_v53  ;;  %v1625_v11 = vadd.f32 %v1734_v63, %v1624_v9 }
 0xbad   :  { %1663 = vst.msk [vmem:[#allocation3 + $0x18] sm:$0xff] %vm56_vm0, %v1655_v10  ;;  %v1653_v14 = vadd.f32 %v1625_v11, %v2548_v57 }
 0xbaf   :  { %1661 = vst.msk [vmem:[#allocation3 + $0x8] sm:$0xff] %vm56_vm0, %v1653_v14 }
 0xc2d   :  { %v1909_v51 = vpop.f32.mrf.mxu1 }
 0xc2e   :  { %v1646_v16 = vadd.f32 %v1909_v51, %v1734_v63 }
 0xc2f   :  { %v1637_v50 = vpop.f32.mrf.mxu1 }
 0xc30   :  { %v1658_v12 = vadd.f32 %v1646_v16, %v2571_v18  ;;  %v1638_v22 = vadd.f32 %v1734_v63, %v1637_v50 }
 0xc31   :  { %v1910_v47 = vpop.f32.mrf.mxu1 }
 0xc32   :  { %1666 = vst.msk [vmem:[#allocation3 + $0x30] sm:$0xff] %vm56_vm0, %v1658_v12  ;;  %v1656_v21 = vadd.f32 %v1638_v22, %v2563_v8  ;;  %v1649_v23 = vadd.f32 %v1910_v47, %v1734_v63 }
 0xc33   :  { %v1640_v53 = vpop.f32.mrf.mxu1 }
 0xc34   :  { %1664 = vst.msk [vmem:[#allocation3 + $0x20] sm:$0xff] %vm56_vm0, %v1656_v21  ;;  %v1659_v57 = vadd.f32 %v1649_v23, %v2591_v32  ;;  %v1641_v26 = vadd.f32 %v1734_v63, %v1640_v53 }
 0xc36   :  { %1667 = vst.msk [vmem:[#allocation3 + $0x38] sm:$0xff] %vm56_vm0, %v1659_v57  ;;  %v1657_v28 = vadd.f32 %v1641_v26, %v2578_v25 }
 0xc38   :  { %1665 = vst.msk [vmem:[#allocation3 + $0x28] sm:$0xff] %vm56_vm0, %v1657_v28 }
 0xc39   :  { %2076 = shalt.err (!%p2073_p4)
}
 0xc3a   :  { %s2094_s25 = smov 128  }
 0xc3b   :  { %1679 = dma.vmem_to_hbm [thread:$0]  %s1674_s23, 1024, %s2732_s13, [#allocation4], %s2094_s25, %s2094_s25, %s2092_s1  }
 0xc3c   :  { %2085 = dma.done.wait [#allocation4], 1024  }
 0xc3d   :  { %2086 = vsyncadd [#allocation4], 4294966272 }
 0xc3e   :  { %1683 = vsyncpa [#allocation4], 1 }

</bundles_post_ra>
